<compile_context>
chip_gen: v6e
topology: v6e:2x2x1
jax: 0.10.0
libtpu: 0.0.40
codegen_flags: <defaults>
</compile_context>

<pallas_src>
import jax
import jax.numpy as jnp
from jax import lax
from jax.experimental import pallas as pl
from jax.experimental.pallas import tpu as pltpu


def gru_tagger_kernel(x_ref, w_ih_ref, b_ih_ref,
                      w_hh_r_ref, w_hh_z_ref, w_hh_n_ref,
                      b_hh_r_ref, b_hh_z_ref, b_hh_n_ref,
                      w_head_ref, b_head_ref,
                      tag_ref, end_ref, hn_ref):
    T = x_ref.shape[0]
    H = w_hh_r_ref.shape[0]
    O = tag_ref.shape[1]

    # Input contributions for all timesteps at once (kept in vregs, no scratch).
    xg = (jnp.dot(x_ref[...], w_ih_ref[...],
                  preferred_element_type=jnp.float32)
          + b_ih_ref[...])                                  # (T, 3H), gates [r,z,n]
    # Loop-invariant per-gate splits are done ONCE, outside the recurrence.
    xg_r, xg_z, xg_n = xg[:, 0:H], xg[:, H:2 * H], xg[:, 2 * H:3 * H]
    w_hh_r = w_hh_r_ref[...]
    w_hh_z = w_hh_z_ref[...]
    w_hh_n = w_hh_n_ref[...]
    b_hh_r = b_hh_r_ref[...]
    b_hh_z = b_hh_z_ref[...]
    b_hh_n = b_hh_n_ref[...]

    # Register-carried hidden state; fully unrolled recurrence (T static, small).
    h = jnp.zeros((1, H), jnp.float32)
    outs = []
    for t in range(T):
        gh_r = jnp.dot(h, w_hh_r, preferred_element_type=jnp.float32) + b_hh_r
        gh_z = jnp.dot(h, w_hh_z, preferred_element_type=jnp.float32) + b_hh_z
        gh_n = jnp.dot(h, w_hh_n, preferred_element_type=jnp.float32) + b_hh_n
        r = jax.nn.sigmoid(xg_r[t:t + 1, :] + gh_r)
        z = jax.nn.sigmoid(xg_z[t:t + 1, :] + gh_z)
        n = jnp.tanh(xg_n[t:t + 1, :] + r * gh_n)
        h = (1.0 - z) * n + z * h
        outs.append(h)

    g = jnp.concatenate(outs, axis=0)                       # (T, H), register-resident

    # Fused heads: single matmul covering hidden2tag ([0:O]) and hidden2endpoint ([O:O+2]).
    head = (jnp.dot(g, w_head_ref[...],
                    preferred_element_type=jnp.float32)
            + b_head_ref[...])                              # (T, O + 2)

    # hidden2tag head: tag_scores = (1 + tanh(.)) / 2   (matches the PyTorch module)
    tag_ref[...] = (1.0 + jnp.tanh(head[:, 0:O])) * 0.5

    # hidden2endpoint head: log_softmax over the 2 classes (dim=1 in the reference)
    ep = head[:, O:O + 2]
    m = jnp.max(ep, axis=1, keepdims=True)
    lse = m + jnp.log(jnp.sum(jnp.exp(ep - m), axis=1, keepdims=True))
    end_ref[...] = ep - lse

    # Final hidden state (PyTorch hidden_n squeezed to (1, H) here).
    hn_ref[...] = h


def gru_tagger_forward(sequence, packed):
    """sequence: (T, E) float32.  Returns (tag_scores, endpoint_scores, hidden_n, None)."""
    T, _ = sequence.shape
    H, O = packed["H"], packed["O"]

    vmem = pl.BlockSpec(memory_space=pltpu.MemorySpace.VMEM)
    inputs = (
        sequence,
        packed["w_ih_t"], packed["b_ih"],
        packed["w_hh_r"], packed["w_hh_z"], packed["w_hh_n"],
        packed["b_hh_r"], packed["b_hh_z"], packed["b_hh_n"],
        packed["w_head"], packed["b_head"],
    )

    tag_scores, endpoint_scores, hidden_n = pl.pallas_call(
        gru_tagger_kernel,
        out_shape=(
            jax.ShapeDtypeStruct((T, O), jnp.float32),
            jax.ShapeDtypeStruct((T, 2), jnp.float32),
            jax.ShapeDtypeStruct((1, H), jnp.float32),
        ),
        in_specs=[vmem] * len(inputs),
        out_specs=(vmem, vmem, vmem),
    )(*inputs)

    # PyTorch hidden_n has shape (num_layers=1, batch=1, H)
    return tag_scores, endpoint_scores, hidden_n.reshape(1, 1, H), None


def init_params(key, embedding_dim, hidden_dim, output_dim):
    """Deterministic init mimicking PyTorch's U(-1/sqrt(H), 1/sqrt(H)), PyTorch layout."""
    k = 1.0 / jnp.sqrt(jnp.float32(hidden_dim))
    keys = jax.random.split(key, 8)

    def u(kk, shape):
        return jax.random.uniform(kk, shape, jnp.float32, -k, k)

    return {
        "w_ih": u(keys[0], (3 * hidden_dim, embedding_dim)),  # weight_ih_l0, gates [r,z,n]
        "w_hh": u(keys[1], (3 * hidden_dim, hidden_dim)),     # weight_hh_l0
        "b_ih": u(keys[2], (3 * hidden_dim,)),
        "b_hh": u(keys[3], (3 * hidden_dim,)),
        "w_tag": u(keys[4], (output_dim, hidden_dim)),         # nn.Linear(hidden, output)
        "b_tag": u(keys[5], (output_dim,)),
        "w_end": u(keys[6], (2, hidden_dim)),                  # nn.Linear(hidden, 2)
        "b_end": u(keys[7], (2,)),
    }


def pack_params(raw):
    """Transpose + per-gate split PyTorch-layout weights into the kernel layout."""
    H = raw["w_hh"].shape[1]
    O = raw["w_tag"].shape[0]
    w_hh = raw["w_hh"]
    b_hh = raw["b_hh"]
    return {
        "w_ih_t": raw["w_ih"].T,                              # (E, 3H)
        "b_ih": raw["b_ih"].reshape(1, 3 * H),                # (1, 3H)
        "w_hh_r": w_hh[0:H].T,                                # (H, H)
        "w_hh_z": w_hh[H:2 * H].T,                            # (H, H)
        "w_hh_n": w_hh[2 * H:3 * H].T,                        # (H, H)
        "b_hh_r": b_hh[0:H].reshape(1, H),
        "b_hh_z": b_hh[H:2 * H].reshape(1, H),
        "b_hh_n": b_hh[2 * H:3 * H].reshape(1, H),
        # fused heads: columns [0:O] -> hidden2tag, [O:O+2] -> hidden2endpoint
        "w_head": jnp.concatenate([raw["w_tag"].T, raw["w_end"].T], axis=1),   # (H, O+2)
        "b_head": jnp.concatenate([raw["b_tag"], raw["b_end"]]).reshape(1, O + 2),
        "H": H,
        "O": O,
    }


def reference_forward(sequence, raw):
    """Pure-JAX reference matching the PyTorch module semantics."""
    H = raw["w_hh"].shape[1]
    hi = lambda a, b: jnp.dot(a, b, precision=jax.lax.Precision.HIGHEST)

    def cell(h, x):
        gi = hi(raw["w_ih"], x) + raw["b_ih"]
        gh = hi(raw["w_hh"], h) + raw["b_hh"]
        r = jax.nn.sigmoid(gi[0:H] + gh[0:H])
        z = jax.nn.sigmoid(gi[H:2 * H] + gh[H:2 * H])
        n = jnp.tanh(gi[2 * H:] + r * gh[2 * H:])
        h_new = (1.0 - z) * n + z * h
        return h_new, h_new

    h_last, hs = lax.scan(cell, jnp.zeros((H,), jnp.float32), sequence)
    tag = (1.0 + jnp.tanh(hi(hs, raw["w_tag"].T) + raw["b_tag"])) * 0.5
    end = jax.nn.log_softmax(hi(hs, raw["w_end"].T) + raw["b_end"], axis=1)
    return tag, end, h_last.reshape(1, 1, H)


if __name__ == "__main__":
    T, E, H, O = 8, 16, 32, 8   # seq=8, embedding_dim=16, hidden_dim=32, output_dim=8

    root = jax.random.PRNGKey(0)
    k_params, k_x = jax.random.split(root)
    raw = init_params(k_params, E, H, O)
    packed = pack_params(raw)
    sequence = jax.random.normal(k_x, (T, E), jnp.float32)

    tag_scores, endpoint_scores, hidden_n, _ = gru_tagger_forward(sequence, packed)
    jax.block_until_ready((tag_scores, endpoint_scores, hidden_n))

    assert tag_scores.shape == (T, O)
    assert endpoint_scores.shape == (T, 2)
    assert hidden_n.shape == (1, 1, H)

    ref_tag, ref_end, ref_hn = reference_forward(sequence, raw)
    assert jnp.allclose(tag_scores, ref_tag, atol=1e-4, rtol=1e-3)
    assert jnp.allclose(endpoint_scores, ref_end, atol=1e-4, rtol=1e-3)
    assert jnp.allclose(hidden_n, ref_hn, atol=1e-4, rtol=1e-3)

    print("KERNEL_OK")
</pallas_src>

<mosaic_0001>
module attributes {stable_mosaic.version = 11 : i64} {
  func.func @gru_tagger_kernel(%arg0: memref<8x16xf32, #tpu.memory_space<vmem>>, %arg1: memref<16x96xf32, #tpu.memory_space<vmem>>, %arg2: memref<1x96xf32, #tpu.memory_space<vmem>>, %arg3: memref<32x32xf32, #tpu.memory_space<vmem>>, %arg4: memref<32x32xf32, #tpu.memory_space<vmem>>, %arg5: memref<32x32xf32, #tpu.memory_space<vmem>>, %arg6: memref<1x32xf32, #tpu.memory_space<vmem>>, %arg7: memref<1x32xf32, #tpu.memory_space<vmem>>, %arg8: memref<1x32xf32, #tpu.memory_space<vmem>>, %arg9: memref<32x10xf32, #tpu.memory_space<vmem>>, %arg10: memref<1x10xf32, #tpu.memory_space<vmem>>, %arg11: memref<8x8xf32, #tpu.memory_space<vmem>>, %arg12: memref<8x2xf32, #tpu.memory_space<vmem>>, %arg13: memref<1x32xf32, #tpu.memory_space<vmem>>) attributes {dimension_semantics = [], scalar_prefetch = 0 : i64, scratch_operands = 0 : i64, tpu.core_type = #tpu.core_type<tc>} {
    %c0 = arith.constant 0 : index
    %c0_0 = arith.constant 0 : index
    %0 = vector.load %arg0[%c0, %c0_0] : memref<8x16xf32, #tpu.memory_space<vmem>>, vector<8x16xf32>
    %c0_1 = arith.constant 0 : index
    %c0_2 = arith.constant 0 : index
    %1 = vector.load %arg1[%c0_1, %c0_2] : memref<16x96xf32, #tpu.memory_space<vmem>>, vector<16x96xf32>
    %cst = arith.constant dense<0.000000e+00> : vector<8x96xf32>
    %2 = tpu.matmul %0, %1, %cst {dimension_numbers = #tpu.dot_dimension_numbers<[1], [0], [0], [1], [0, 0, 1, 1], [], []>} : vector<8x16xf32>, vector<16x96xf32>, vector<8x96xf32> -> vector<8x96xf32>
    %c0_3 = arith.constant 0 : index
    %c0_4 = arith.constant 0 : index
    %3 = vector.load %arg2[%c0_3, %c0_4] : memref<1x96xf32, #tpu.memory_space<vmem>>, vector<1x96xf32>
    %4 = vector.broadcast %3 : vector<1x96xf32> to vector<8x96xf32>
    %5 = arith.addf %2, %4 : vector<8x96xf32>
    %6 = vector.extract_strided_slice %5 {offsets = [0, 0], sizes = [8, 32], strides = [1, 1]} : vector<8x96xf32> to vector<8x32xf32>
    %7 = vector.extract_strided_slice %5 {offsets = [0, 32], sizes = [8, 32], strides = [1, 1]} : vector<8x96xf32> to vector<8x32xf32>
    %8 = vector.extract_strided_slice %5 {offsets = [0, 64], sizes = [8, 32], strides = [1, 1]} : vector<8x96xf32> to vector<8x32xf32>
    %c0_5 = arith.constant 0 : index
    %c0_6 = arith.constant 0 : index
    %9 = vector.load %arg3[%c0_5, %c0_6] : memref<32x32xf32, #tpu.memory_space<vmem>>, vector<32x32xf32>
    %c0_7 = arith.constant 0 : index
    %c0_8 = arith.constant 0 : index
    %10 = vector.load %arg4[%c0_7, %c0_8] : memref<32x32xf32, #tpu.memory_space<vmem>>, vector<32x32xf32>
    %c0_9 = arith.constant 0 : index
    %c0_10 = arith.constant 0 : index
    %11 = vector.load %arg5[%c0_9, %c0_10] : memref<32x32xf32, #tpu.memory_space<vmem>>, vector<32x32xf32>
    %c0_11 = arith.constant 0 : index
    %c0_12 = arith.constant 0 : index
    %12 = vector.load %arg6[%c0_11, %c0_12] : memref<1x32xf32, #tpu.memory_space<vmem>>, vector<1x32xf32>
    %c0_13 = arith.constant 0 : index
    %c0_14 = arith.constant 0 : index
    %13 = vector.load %arg7[%c0_13, %c0_14] : memref<1x32xf32, #tpu.memory_space<vmem>>, vector<1x32xf32>
    %c0_15 = arith.constant 0 : index
    %c0_16 = arith.constant 0 : index
    %14 = vector.load %arg8[%c0_15, %c0_16] : memref<1x32xf32, #tpu.memory_space<vmem>>, vector<1x32xf32>
    %cst_17 = arith.constant 0.000000e+00 : f32
    %15 = vector.broadcast %cst_17 : f32 to vector<1x32xf32>
    %cst_18 = arith.constant dense<0.000000e+00> : vector<1x32xf32>
    %16 = tpu.matmul %15, %9, %cst_18 {dimension_numbers = #tpu.dot_dimension_numbers<[1], [0], [0], [1], [0, 0, 1, 1], [], []>} : vector<1x32xf32>, vector<32x32xf32>, vector<1x32xf32> -> vector<1x32xf32>
    %17 = arith.addf %16, %12 : vector<1x32xf32>
    %cst_19 = arith.constant dense<0.000000e+00> : vector<1x32xf32>
    %18 = tpu.matmul %15, %10, %cst_19 {dimension_numbers = #tpu.dot_dimension_numbers<[1], [0], [0], [1], [0, 0, 1, 1], [], []>} : vector<1x32xf32>, vector<32x32xf32>, vector<1x32xf32> -> vector<1x32xf32>
    %19 = arith.addf %18, %13 : vector<1x32xf32>
    %cst_20 = arith.constant dense<0.000000e+00> : vector<1x32xf32>
    %20 = tpu.matmul %15, %11, %cst_20 {dimension_numbers = #tpu.dot_dimension_numbers<[1], [0], [0], [1], [0, 0, 1, 1], [], []>} : vector<1x32xf32>, vector<32x32xf32>, vector<1x32xf32> -> vector<1x32xf32>
    %21 = arith.addf %20, %14 : vector<1x32xf32>
    %22 = vector.extract_strided_slice %6 {offsets = [0, 0], sizes = [1, 32], strides = [1, 1]} : vector<8x32xf32> to vector<1x32xf32>
    %23 = arith.addf %22, %17 : vector<1x32xf32>
    %24 = arith.negf %23 : vector<1x32xf32>
    %25 = math.exp %24 : vector<1x32xf32>
    %cst_21 = arith.constant 1.000000e+00 : f32
    %26 = vector.broadcast %cst_21 : f32 to vector<1x32xf32>
    %27 = arith.addf %26, %25 : vector<1x32xf32>
    %28 = arith.divf %26, %27 : vector<1x32xf32>
    %29 = vector.extract_strided_slice %7 {offsets = [0, 0], sizes = [1, 32], strides = [1, 1]} : vector<8x32xf32> to vector<1x32xf32>
    %30 = arith.addf %29, %19 : vector<1x32xf32>
    %31 = arith.negf %30 : vector<1x32xf32>
    %32 = math.exp %31 : vector<1x32xf32>
    %cst_22 = arith.constant 1.000000e+00 : f32
    %33 = vector.broadcast %cst_22 : f32 to vector<1x32xf32>
    %34 = arith.addf %33, %32 : vector<1x32xf32>
    %35 = arith.divf %33, %34 : vector<1x32xf32>
    %36 = vector.extract_strided_slice %8 {offsets = [0, 0], sizes = [1, 32], strides = [1, 1]} : vector<8x32xf32> to vector<1x32xf32>
    %37 = arith.mulf %28, %21 : vector<1x32xf32>
    %38 = arith.addf %36, %37 : vector<1x32xf32>
    %39 = math.tanh %38 : vector<1x32xf32>
    %cst_23 = arith.constant 1.000000e+00 : f32
    %40 = vector.broadcast %cst_23 : f32 to vector<1x32xf32>
    %41 = arith.subf %40, %35 : vector<1x32xf32>
    %42 = arith.mulf %41, %39 : vector<1x32xf32>
    %43 = arith.mulf %35, %15 : vector<1x32xf32>
    %44 = arith.addf %42, %43 : vector<1x32xf32>
    %cst_24 = arith.constant dense<0.000000e+00> : vector<1x32xf32>
    %45 = tpu.matmul %44, %9, %cst_24 {dimension_numbers = #tpu.dot_dimension_numbers<[1], [0], [0], [1], [0, 0, 1, 1], [], []>} : vector<1x32xf32>, vector<32x32xf32>, vector<1x32xf32> -> vector<1x32xf32>
    %46 = arith.addf %45, %12 : vector<1x32xf32>
    %cst_25 = arith.constant dense<0.000000e+00> : vector<1x32xf32>
    %47 = tpu.matmul %44, %10, %cst_25 {dimension_numbers = #tpu.dot_dimension_numbers<[1], [0], [0], [1], [0, 0, 1, 1], [], []>} : vector<1x32xf32>, vector<32x32xf32>, vector<1x32xf32> -> vector<1x32xf32>
    %48 = arith.addf %47, %13 : vector<1x32xf32>
    %cst_26 = arith.constant dense<0.000000e+00> : vector<1x32xf32>
    %49 = tpu.matmul %44, %11, %cst_26 {dimension_numbers = #tpu.dot_dimension_numbers<[1], [0], [0], [1], [0, 0, 1, 1], [], []>} : vector<1x32xf32>, vector<32x32xf32>, vector<1x32xf32> -> vector<1x32xf32>
    %50 = arith.addf %49, %14 : vector<1x32xf32>
    %51 = vector.extract_strided_slice %6 {offsets = [1, 0], sizes = [1, 32], strides = [1, 1]} : vector<8x32xf32> to vector<1x32xf32>
    %52 = arith.addf %51, %46 : vector<1x32xf32>
    %53 = arith.negf %52 : vector<1x32xf32>
    %54 = math.exp %53 : vector<1x32xf32>
    %cst_27 = arith.constant 1.000000e+00 : f32
    %55 = vector.broadcast %cst_27 : f32 to vector<1x32xf32>
    %56 = arith.addf %55, %54 : vector<1x32xf32>
    %57 = arith.divf %55, %56 : vector<1x32xf32>
    %58 = vector.extract_strided_slice %7 {offsets = [1, 0], sizes = [1, 32], strides = [1, 1]} : vector<8x32xf32> to vector<1x32xf32>
    %59 = arith.addf %58, %48 : vector<1x32xf32>
    %60 = arith.negf %59 : vector<1x32xf32>
    %61 = math.exp %60 : vector<1x32xf32>
    %cst_28 = arith.constant 1.000000e+00 : f32
    %62 = vector.broadcast %cst_28 : f32 to vector<1x32xf32>
    %63 = arith.addf %62, %61 : vector<1x32xf32>
    %64 = arith.divf %62, %63 : vector<1x32xf32>
    %65 = vector.extract_strided_slice %8 {offsets = [1, 0], sizes = [1, 32], strides = [1, 1]} : vector<8x32xf32> to vector<1x32xf32>
    %66 = arith.mulf %57, %50 : vector<1x32xf32>
    %67 = arith.addf %65, %66 : vector<1x32xf32>
    %68 = math.tanh %67 : vector<1x32xf32>
    %cst_29 = arith.constant 1.000000e+00 : f32
    %69 = vector.broadcast %cst_29 : f32 to vector<1x32xf32>
    %70 = arith.subf %69, %64 : vector<1x32xf32>
    %71 = arith.mulf %70, %68 : vector<1x32xf32>
    %72 = arith.mulf %64, %44 : vector<1x32xf32>
    %73 = arith.addf %71, %72 : vector<1x32xf32>
    %cst_30 = arith.constant dense<0.000000e+00> : vector<1x32xf32>
    %74 = tpu.matmul %73, %9, %cst_30 {dimension_numbers = #tpu.dot_dimension_numbers<[1], [0], [0], [1], [0, 0, 1, 1], [], []>} : vector<1x32xf32>, vector<32x32xf32>, vector<1x32xf32> -> vector<1x32xf32>
    %75 = arith.addf %74, %12 : vector<1x32xf32>
    %cst_31 = arith.constant dense<0.000000e+00> : vector<1x32xf32>
    %76 = tpu.matmul %73, %10, %cst_31 {dimension_numbers = #tpu.dot_dimension_numbers<[1], [0], [0], [1], [0, 0, 1, 1], [], []>} : vector<1x32xf32>, vector<32x32xf32>, vector<1x32xf32> -> vector<1x32xf32>
    %77 = arith.addf %76, %13 : vector<1x32xf32>
    %cst_32 = arith.constant dense<0.000000e+00> : vector<1x32xf32>
    %78 = tpu.matmul %73, %11, %cst_32 {dimension_numbers = #tpu.dot_dimension_numbers<[1], [0], [0], [1], [0, 0, 1, 1], [], []>} : vector<1x32xf32>, vector<32x32xf32>, vector<1x32xf32> -> vector<1x32xf32>
    %79 = arith.addf %78, %14 : vector<1x32xf32>
    %80 = vector.extract_strided_slice %6 {offsets = [2, 0], sizes = [1, 32], strides = [1, 1]} : vector<8x32xf32> to vector<1x32xf32>
    %81 = arith.addf %80, %75 : vector<1x32xf32>
    %82 = arith.negf %81 : vector<1x32xf32>
    %83 = math.exp %82 : vector<1x32xf32>
    %cst_33 = arith.constant 1.000000e+00 : f32
    %84 = vector.broadcast %cst_33 : f32 to vector<1x32xf32>
    %85 = arith.addf %84, %83 : vector<1x32xf32>
    %86 = arith.divf %84, %85 : vector<1x32xf32>
    %87 = vector.extract_strided_slice %7 {offsets = [2, 0], sizes = [1, 32], strides = [1, 1]} : vector<8x32xf32> to vector<1x32xf32>
    %88 = arith.addf %87, %77 : vector<1x32xf32>
    %89 = arith.negf %88 : vector<1x32xf32>
    %90 = math.exp %89 : vector<1x32xf32>
    %cst_34 = arith.constant 1.000000e+00 : f32
    %91 = vector.broadcast %cst_34 : f32 to vector<1x32xf32>
    %92 = arith.addf %91, %90 : vector<1x32xf32>
    %93 = arith.divf %91, %92 : vector<1x32xf32>
    %94 = vector.extract_strided_slice %8 {offsets = [2, 0], sizes = [1, 32], strides = [1, 1]} : vector<8x32xf32> to vector<1x32xf32>
    %95 = arith.mulf %86, %79 : vector<1x32xf32>
    %96 = arith.addf %94, %95 : vector<1x32xf32>
    %97 = math.tanh %96 : vector<1x32xf32>
    %cst_35 = arith.constant 1.000000e+00 : f32
    %98 = vector.broadcast %cst_35 : f32 to vector<1x32xf32>
    %99 = arith.subf %98, %93 : vector<1x32xf32>
    %100 = arith.mulf %99, %97 : vector<1x32xf32>
    %101 = arith.mulf %93, %73 : vector<1x32xf32>
    %102 = arith.addf %100, %101 : vector<1x32xf32>
    %cst_36 = arith.constant dense<0.000000e+00> : vector<1x32xf32>
    %103 = tpu.matmul %102, %9, %cst_36 {dimension_numbers = #tpu.dot_dimension_numbers<[1], [0], [0], [1], [0, 0, 1, 1], [], []>} : vector<1x32xf32>, vector<32x32xf32>, vector<1x32xf32> -> vector<1x32xf32>
    %104 = arith.addf %103, %12 : vector<1x32xf32>
    %cst_37 = arith.constant dense<0.000000e+00> : vector<1x32xf32>
    %105 = tpu.matmul %102, %10, %cst_37 {dimension_numbers = #tpu.dot_dimension_numbers<[1], [0], [0], [1], [0, 0, 1, 1], [], []>} : vector<1x32xf32>, vector<32x32xf32>, vector<1x32xf32> -> vector<1x32xf32>
    %106 = arith.addf %105, %13 : vector<1x32xf32>
    %cst_38 = arith.constant dense<0.000000e+00> : vector<1x32xf32>
    %107 = tpu.matmul %102, %11, %cst_38 {dimension_numbers = #tpu.dot_dimension_numbers<[1], [0], [0], [1], [0, 0, 1, 1], [], []>} : vector<1x32xf32>, vector<32x32xf32>, vector<1x32xf32> -> vector<1x32xf32>
    %108 = arith.addf %107, %14 : vector<1x32xf32>
    %109 = vector.extract_strided_slice %6 {offsets = [3, 0], sizes = [1, 32], strides = [1, 1]} : vector<8x32xf32> to vector<1x32xf32>
    %110 = arith.addf %109, %104 : vector<1x32xf32>
    %111 = arith.negf %110 : vector<1x32xf32>
    %112 = math.exp %111 : vector<1x32xf32>
    %cst_39 = arith.constant 1.000000e+00 : f32
    %113 = vector.broadcast %cst_39 : f32 to vector<1x32xf32>
    %114 = arith.addf %113, %112 : vector<1x32xf32>
    %115 = arith.divf %113, %114 : vector<1x32xf32>
    %116 = vector.extract_strided_slice %7 {offsets = [3, 0], sizes = [1, 32], strides = [1, 1]} : vector<8x32xf32> to vector<1x32xf32>
    %117 = arith.addf %116, %106 : vector<1x32xf32>
    %118 = arith.negf %117 : vector<1x32xf32>
    %119 = math.exp %118 : vector<1x32xf32>
    %cst_40 = arith.constant 1.000000e+00 : f32
    %120 = vector.broadcast %cst_40 : f32 to vector<1x32xf32>
    %121 = arith.addf %120, %119 : vector<1x32xf32>
    %122 = arith.divf %120, %121 : vector<1x32xf32>
    %123 = vector.extract_strided_slice %8 {offsets = [3, 0], sizes = [1, 32], strides = [1, 1]} : vector<8x32xf32> to vector<1x32xf32>
    %124 = arith.mulf %115, %108 : vector<1x32xf32>
    %125 = arith.addf %123, %124 : vector<1x32xf32>
    %126 = math.tanh %125 : vector<1x32xf32>
    %cst_41 = arith.constant 1.000000e+00 : f32
    %127 = vector.broadcast %cst_41 : f32 to vector<1x32xf32>
    %128 = arith.subf %127, %122 : vector<1x32xf32>
    %129 = arith.mulf %128, %126 : vector<1x32xf32>
    %130 = arith.mulf %122, %102 : vector<1x32xf32>
    %131 = arith.addf %129, %130 : vector<1x32xf32>
    %cst_42 = arith.constant dense<0.000000e+00> : vector<1x32xf32>
    %132 = tpu.matmul %131, %9, %cst_42 {dimension_numbers = #tpu.dot_dimension_numbers<[1], [0], [0], [1], [0, 0, 1, 1], [], []>} : vector<1x32xf32>, vector<32x32xf32>, vector<1x32xf32> -> vector<1x32xf32>
    %133 = arith.addf %132, %12 : vector<1x32xf32>
    %cst_43 = arith.constant dense<0.000000e+00> : vector<1x32xf32>
    %134 = tpu.matmul %131, %10, %cst_43 {dimension_numbers = #tpu.dot_dimension_numbers<[1], [0], [0], [1], [0, 0, 1, 1], [], []>} : vector<1x32xf32>, vector<32x32xf32>, vector<1x32xf32> -> vector<1x32xf32>
    %135 = arith.addf %134, %13 : vector<1x32xf32>
    %cst_44 = arith.constant dense<0.000000e+00> : vector<1x32xf32>
    %136 = tpu.matmul %131, %11, %cst_44 {dimension_numbers = #tpu.dot_dimension_numbers<[1], [0], [0], [1], [0, 0, 1, 1], [], []>} : vector<1x32xf32>, vector<32x32xf32>, vector<1x32xf32> -> vector<1x32xf32>
    %137 = arith.addf %136, %14 : vector<1x32xf32>
    %138 = vector.extract_strided_slice %6 {offsets = [4, 0], sizes = [1, 32], strides = [1, 1]} : vector<8x32xf32> to vector<1x32xf32>
    %139 = arith.addf %138, %133 : vector<1x32xf32>
    %140 = arith.negf %139 : vector<1x32xf32>
    %141 = math.exp %140 : vector<1x32xf32>
    %cst_45 = arith.constant 1.000000e+00 : f32
    %142 = vector.broadcast %cst_45 : f32 to vector<1x32xf32>
    %143 = arith.addf %142, %141 : vector<1x32xf32>
    %144 = arith.divf %142, %143 : vector<1x32xf32>
    %145 = vector.extract_strided_slice %7 {offsets = [4, 0], sizes = [1, 32], strides = [1, 1]} : vector<8x32xf32> to vector<1x32xf32>
    %146 = arith.addf %145, %135 : vector<1x32xf32>
    %147 = arith.negf %146 : vector<1x32xf32>
    %148 = math.exp %147 : vector<1x32xf32>
    %cst_46 = arith.constant 1.000000e+00 : f32
    %149 = vector.broadcast %cst_46 : f32 to vector<1x32xf32>
    %150 = arith.addf %149, %148 : vector<1x32xf32>
    %151 = arith.divf %149, %150 : vector<1x32xf32>
    %152 = vector.extract_strided_slice %8 {offsets = [4, 0], sizes = [1, 32], strides = [1, 1]} : vector<8x32xf32> to vector<1x32xf32>
    %153 = arith.mulf %144, %137 : vector<1x32xf32>
    %154 = arith.addf %152, %153 : vector<1x32xf32>
    %155 = math.tanh %154 : vector<1x32xf32>
    %cst_47 = arith.constant 1.000000e+00 : f32
    %156 = vector.broadcast %cst_47 : f32 to vector<1x32xf32>
    %157 = arith.subf %156, %151 : vector<1x32xf32>
    %158 = arith.mulf %157, %155 : vector<1x32xf32>
    %159 = arith.mulf %151, %131 : vector<1x32xf32>
    %160 = arith.addf %158, %159 : vector<1x32xf32>
    %cst_48 = arith.constant dense<0.000000e+00> : vector<1x32xf32>
    %161 = tpu.matmul %160, %9, %cst_48 {dimension_numbers = #tpu.dot_dimension_numbers<[1], [0], [0], [1], [0, 0, 1, 1], [], []>} : vector<1x32xf32>, vector<32x32xf32>, vector<1x32xf32> -> vector<1x32xf32>
    %162 = arith.addf %161, %12 : vector<1x32xf32>
    %cst_49 = arith.constant dense<0.000000e+00> : vector<1x32xf32>
    %163 = tpu.matmul %160, %10, %cst_49 {dimension_numbers = #tpu.dot_dimension_numbers<[1], [0], [0], [1], [0, 0, 1, 1], [], []>} : vector<1x32xf32>, vector<32x32xf32>, vector<1x32xf32> -> vector<1x32xf32>
    %164 = arith.addf %163, %13 : vector<1x32xf32>
    %cst_50 = arith.constant dense<0.000000e+00> : vector<1x32xf32>
    %165 = tpu.matmul %160, %11, %cst_50 {dimension_numbers = #tpu.dot_dimension_numbers<[1], [0], [0], [1], [0, 0, 1, 1], [], []>} : vector<1x32xf32>, vector<32x32xf32>, vector<1x32xf32> -> vector<1x32xf32>
    %166 = arith.addf %165, %14 : vector<1x32xf32>
    %167 = vector.extract_strided_slice %6 {offsets = [5, 0], sizes = [1, 32], strides = [1, 1]} : vector<8x32xf32> to vector<1x32xf32>
    %168 = arith.addf %167, %162 : vector<1x32xf32>
    %169 = arith.negf %168 : vector<1x32xf32>
    %170 = math.exp %169 : vector<1x32xf32>
    %cst_51 = arith.constant 1.000000e+00 : f32
    %171 = vector.broadcast %cst_51 : f32 to vector<1x32xf32>
    %172 = arith.addf %171, %170 : vector<1x32xf32>
    %173 = arith.divf %171, %172 : vector<1x32xf32>
    %174 = vector.extract_strided_slice %7 {offsets = [5, 0], sizes = [1, 32], strides = [1, 1]} : vector<8x32xf32> to vector<1x32xf32>
    %175 = arith.addf %174, %164 : vector<1x32xf32>
    %176 = arith.negf %175 : vector<1x32xf32>
    %177 = math.exp %176 : vector<1x32xf32>
    %cst_52 = arith.constant 1.000000e+00 : f32
    %178 = vector.broadcast %cst_52 : f32 to vector<1x32xf32>
    %179 = arith.addf %178, %177 : vector<1x32xf32>
    %180 = arith.divf %178, %179 : vector<1x32xf32>
    %181 = vector.extract_strided_slice %8 {offsets = [5, 0], sizes = [1, 32], strides = [1, 1]} : vector<8x32xf32> to vector<1x32xf32>
    %182 = arith.mulf %173, %166 : vector<1x32xf32>
    %183 = arith.addf %181, %182 : vector<1x32xf32>
    %184 = math.tanh %183 : vector<1x32xf32>
    %cst_53 = arith.constant 1.000000e+00 : f32
    %185 = vector.broadcast %cst_53 : f32 to vector<1x32xf32>
    %186 = arith.subf %185, %180 : vector<1x32xf32>
    %187 = arith.mulf %186, %184 : vector<1x32xf32>
    %188 = arith.mulf %180, %160 : vector<1x32xf32>
    %189 = arith.addf %187, %188 : vector<1x32xf32>
    %cst_54 = arith.constant dense<0.000000e+00> : vector<1x32xf32>
    %190 = tpu.matmul %189, %9, %cst_54 {dimension_numbers = #tpu.dot_dimension_numbers<[1], [0], [0], [1], [0, 0, 1, 1], [], []>} : vector<1x32xf32>, vector<32x32xf32>, vector<1x32xf32> -> vector<1x32xf32>
    %191 = arith.addf %190, %12 : vector<1x32xf32>
    %cst_55 = arith.constant dense<0.000000e+00> : vector<1x32xf32>
    %192 = tpu.matmul %189, %10, %cst_55 {dimension_numbers = #tpu.dot_dimension_numbers<[1], [0], [0], [1], [0, 0, 1, 1], [], []>} : vector<1x32xf32>, vector<32x32xf32>, vector<1x32xf32> -> vector<1x32xf32>
    %193 = arith.addf %192, %13 : vector<1x32xf32>
    %cst_56 = arith.constant dense<0.000000e+00> : vector<1x32xf32>
    %194 = tpu.matmul %189, %11, %cst_56 {dimension_numbers = #tpu.dot_dimension_numbers<[1], [0], [0], [1], [0, 0, 1, 1], [], []>} : vector<1x32xf32>, vector<32x32xf32>, vector<1x32xf32> -> vector<1x32xf32>
    %195 = arith.addf %194, %14 : vector<1x32xf32>
    %196 = vector.extract_strided_slice %6 {offsets = [6, 0], sizes = [1, 32], strides = [1, 1]} : vector<8x32xf32> to vector<1x32xf32>
    %197 = arith.addf %196, %191 : vector<1x32xf32>
    %198 = arith.negf %197 : vector<1x32xf32>
    %199 = math.exp %198 : vector<1x32xf32>
    %cst_57 = arith.constant 1.000000e+00 : f32
    %200 = vector.broadcast %cst_57 : f32 to vector<1x32xf32>
    %201 = arith.addf %200, %199 : vector<1x32xf32>
    %202 = arith.divf %200, %201 : vector<1x32xf32>
    %203 = vector.extract_strided_slice %7 {offsets = [6, 0], sizes = [1, 32], strides = [1, 1]} : vector<8x32xf32> to vector<1x32xf32>
    %204 = arith.addf %203, %193 : vector<1x32xf32>
    %205 = arith.negf %204 : vector<1x32xf32>
    %206 = math.exp %205 : vector<1x32xf32>
    %cst_58 = arith.constant 1.000000e+00 : f32
    %207 = vector.broadcast %cst_58 : f32 to vector<1x32xf32>
    %208 = arith.addf %207, %206 : vector<1x32xf32>
    %209 = arith.divf %207, %208 : vector<1x32xf32>
    %210 = vector.extract_strided_slice %8 {offsets = [6, 0], sizes = [1, 32], strides = [1, 1]} : vector<8x32xf32> to vector<1x32xf32>
    %211 = arith.mulf %202, %195 : vector<1x32xf32>
    %212 = arith.addf %210, %211 : vector<1x32xf32>
    %213 = math.tanh %212 : vector<1x32xf32>
    %cst_59 = arith.constant 1.000000e+00 : f32
    %214 = vector.broadcast %cst_59 : f32 to vector<1x32xf32>
    %215 = arith.subf %214, %209 : vector<1x32xf32>
    %216 = arith.mulf %215, %213 : vector<1x32xf32>
    %217 = arith.mulf %209, %189 : vector<1x32xf32>
    %218 = arith.addf %216, %217 : vector<1x32xf32>
    %cst_60 = arith.constant dense<0.000000e+00> : vector<1x32xf32>
    %219 = tpu.matmul %218, %9, %cst_60 {dimension_numbers = #tpu.dot_dimension_numbers<[1], [0], [0], [1], [0, 0, 1, 1], [], []>} : vector<1x32xf32>, vector<32x32xf32>, vector<1x32xf32> -> vector<1x32xf32>
    %220 = arith.addf %219, %12 : vector<1x32xf32>
    %cst_61 = arith.constant dense<0.000000e+00> : vector<1x32xf32>
    %221 = tpu.matmul %218, %10, %cst_61 {dimension_numbers = #tpu.dot_dimension_numbers<[1], [0], [0], [1], [0, 0, 1, 1], [], []>} : vector<1x32xf32>, vector<32x32xf32>, vector<1x32xf32> -> vector<1x32xf32>
    %222 = arith.addf %221, %13 : vector<1x32xf32>
    %cst_62 = arith.constant dense<0.000000e+00> : vector<1x32xf32>
    %223 = tpu.matmul %218, %11, %cst_62 {dimension_numbers = #tpu.dot_dimension_numbers<[1], [0], [0], [1], [0, 0, 1, 1], [], []>} : vector<1x32xf32>, vector<32x32xf32>, vector<1x32xf32> -> vector<1x32xf32>
    %224 = arith.addf %223, %14 : vector<1x32xf32>
    %225 = vector.extract_strided_slice %6 {offsets = [7, 0], sizes = [1, 32], strides = [1, 1]} : vector<8x32xf32> to vector<1x32xf32>
    %226 = arith.addf %225, %220 : vector<1x32xf32>
    %227 = arith.negf %226 : vector<1x32xf32>
    %228 = math.exp %227 : vector<1x32xf32>
    %cst_63 = arith.constant 1.000000e+00 : f32
    %229 = vector.broadcast %cst_63 : f32 to vector<1x32xf32>
    %230 = arith.addf %229, %228 : vector<1x32xf32>
    %231 = arith.divf %229, %230 : vector<1x32xf32>
    %232 = vector.extract_strided_slice %7 {offsets = [7, 0], sizes = [1, 32], strides = [1, 1]} : vector<8x32xf32> to vector<1x32xf32>
    %233 = arith.addf %232, %222 : vector<1x32xf32>
    %234 = arith.negf %233 : vector<1x32xf32>
    %235 = math.exp %234 : vector<1x32xf32>
    %cst_64 = arith.constant 1.000000e+00 : f32
    %236 = vector.broadcast %cst_64 : f32 to vector<1x32xf32>
    %237 = arith.addf %236, %235 : vector<1x32xf32>
    %238 = arith.divf %236, %237 : vector<1x32xf32>
    %239 = vector.extract_strided_slice %8 {offsets = [7, 0], sizes = [1, 32], strides = [1, 1]} : vector<8x32xf32> to vector<1x32xf32>
    %240 = arith.mulf %231, %224 : vector<1x32xf32>
    %241 = arith.addf %239, %240 : vector<1x32xf32>
    %242 = math.tanh %241 : vector<1x32xf32>
    %cst_65 = arith.constant 1.000000e+00 : f32
    %243 = vector.broadcast %cst_65 : f32 to vector<1x32xf32>
    %244 = arith.subf %243, %238 : vector<1x32xf32>
    %245 = arith.mulf %244, %242 : vector<1x32xf32>
    %246 = arith.mulf %238, %218 : vector<1x32xf32>
    %247 = arith.addf %245, %246 : vector<1x32xf32>
    %248 = tpu.concatenate %44, %73, %102, %131, %160, %189, %218, %247 in 0 : vector<1x32xf32>, vector<1x32xf32>, vector<1x32xf32>, vector<1x32xf32>, vector<1x32xf32>, vector<1x32xf32>, vector<1x32xf32>, vector<1x32xf32> -> vector<8x32xf32>
    %c0_66 = arith.constant 0 : index
    %c0_67 = arith.constant 0 : index
    %249 = vector.load %arg9[%c0_66, %c0_67] : memref<32x10xf32, #tpu.memory_space<vmem>>, vector<32x10xf32>
    %cst_68 = arith.constant dense<0.000000e+00> : vector<8x10xf32>
    %250 = tpu.matmul %248, %249, %cst_68 {dimension_numbers = #tpu.dot_dimension_numbers<[1], [0], [0], [1], [0, 0, 1, 1], [], []>} : vector<8x32xf32>, vector<32x10xf32>, vector<8x10xf32> -> vector<8x10xf32>
    %c0_69 = arith.constant 0 : index
    %c0_70 = arith.constant 0 : index
    %251 = vector.load %arg10[%c0_69, %c0_70] : memref<1x10xf32, #tpu.memory_space<vmem>>, vector<1x10xf32>
    %252 = vector.broadcast %251 : vector<1x10xf32> to vector<8x10xf32>
    %253 = arith.addf %250, %252 : vector<8x10xf32>
    %254 = vector.extract_strided_slice %253 {offsets = [0, 0], sizes = [8, 8], strides = [1, 1]} : vector<8x10xf32> to vector<8x8xf32>
    %255 = math.tanh %254 : vector<8x8xf32>
    %cst_71 = arith.constant 1.000000e+00 : f32
    %256 = vector.broadcast %cst_71 : f32 to vector<8x8xf32>
    %257 = arith.addf %256, %255 : vector<8x8xf32>
    %cst_72 = arith.constant 5.000000e-01 : f32
    %258 = vector.broadcast %cst_72 : f32 to vector<8x8xf32>
    %259 = arith.mulf %257, %258 : vector<8x8xf32>
    %c0_73 = arith.constant 0 : index
    %c0_74 = arith.constant 0 : index
    %260 = vector.load %arg11[%c0_73, %c0_74] : memref<8x8xf32, #tpu.memory_space<vmem>>, vector<8x8xf32>
    tpu.vector_store %arg11[%c0_73, %c0_74], %259 {strides = array<i32>} : memref<8x8xf32, #tpu.memory_space<vmem>>, vector<8x8xf32>,
    %261 = vector.extract_strided_slice %253 {offsets = [0, 8], sizes = [8, 2], strides = [1, 1]} : vector<8x10xf32> to vector<8x2xf32>
    %cst_75 = arith.constant dense<0xFF800000> : vector<8xf32>
    %262 = vector.multi_reduction <maximumf>, %261, %cst_75 [1] : vector<8x2xf32> to vector<8xf32>
    %263 = vector.shape_cast %262 : vector<8xf32> to vector<8x1xf32>
    %264 = vector.broadcast %263 : vector<8x1xf32> to vector<8x2xf32>
    %265 = arith.subf %261, %264 : vector<8x2xf32>
    %266 = math.exp %265 : vector<8x2xf32>
    %cst_76 = arith.constant dense<0.000000e+00> : vector<8xf32>
    %267 = vector.multi_reduction <add>, %266, %cst_76 [1] : vector<8x2xf32> to vector<8xf32>
    %268 = vector.shape_cast %267 : vector<8xf32> to vector<8x1xf32>
    %269 = math.log %268 : vector<8x1xf32>
    %270 = arith.addf %263, %269 : vector<8x1xf32>
    %271 = vector.broadcast %270 : vector<8x1xf32> to vector<8x2xf32>
    %272 = arith.subf %261, %271 : vector<8x2xf32>
    %c0_77 = arith.constant 0 : index
    %c0_78 = arith.constant 0 : index
    %273 = vector.load %arg12[%c0_77, %c0_78] : memref<8x2xf32, #tpu.memory_space<vmem>>, vector<8x2xf32>
    tpu.vector_store %arg12[%c0_77, %c0_78], %272 {strides = array<i32>} : memref<8x2xf32, #tpu.memory_space<vmem>>, vector<8x2xf32>,
    %c0_79 = arith.constant 0 : index
    %c0_80 = arith.constant 0 : index
    %274 = vector.load %arg13[%c0_79, %c0_80] : memref<1x32xf32, #tpu.memory_space<vmem>>, vector<1x32xf32>
    tpu.vector_store %arg13[%c0_79, %c0_80], %247 {strides = array<i32>} : memref<1x32xf32, #tpu.memory_space<vmem>>, vector<1x32xf32>,
    return
  }
}

</mosaic_0001>

<bundles_post_ra>
// kernel: tpu_custom_call.1
= control target key start
LH: loop header
LB: loop body
LE: loop exit
PB: predicated region body
PF: predicated region fallthrough
CT: control target
= control target key end

     0   :  { %19 = vsyncpa [#allocation3], 0  ;;  %s3794_s0 = inlined_call_operand.hbm [shape: f32[8,16], index: 0, kind: input, shape index: {}]   ;;  %s3795_s1 = inlined_call_operand.vmem [shape: f32[16,96], index: 1, kind: input, shape index: {}]   ;;  %s3796_s2 = inlined_call_operand.hbm [shape: f32[1,96], index: 2, kind: input, shape index: {}]   ;;  %s3797_s3 = inlined_call_operand.vmem [shape: f32[32,32], index: 3, kind: input, shape index: {}]   ;;  %s3798_s4 = inlined_call_operand.hbm [shape: f32[32,32], index: 4, kind: input, shape index: {}]   ;;  %s3799_s5 = inlined_call_operand.hbm [shape: f32[32,32], index: 5, kind: input, shape index: {}]   ;;  %s3800_s6 = inlined_call_operand.hbm [shape: f32[1,32], index: 6, kind: input, shape index: {}]   ;;  %s3801_s7 = inlined_call_operand.hbm [shape: f32[1,32], index: 7, kind: input, shape index: {}]   ;;  %s3802_s8 = inlined_call_operand.hbm [shape: f32[1,32], index: 8, kind: input, shape index: {}]   ;;  %s3803_s9 = inlined_call_operand.vmem [shape: f32[32,10], index: 9, kind: input, shape index: {}]   ;;  %s3804_s10 = inlined_call_operand.vmem [shape: f32[1,10], index: 10, kind: input, shape index: {}]   ;;  %s3805_s11 = inlined_call_operand.hbm [shape: f32[8,8], index: 11, kind: output, shape index: {0}]   ;;  %s3806_s12 = inlined_call_operand.vmem [shape: f32[8,2], index: 12, kind: output, shape index: {1}]   ;;  %s3807_s13 = inlined_call_operand.hbm [shape: f32[1,32], index: 13, kind: output, shape index: {2}]  }
   0x1   :  { %20 = vsyncpa [#allocation6], 0 }
   0x2   :  { %21 = vsyncpa [#allocation9], 0 }
   0x3   :  { %22 = vsyncpa [#allocation12], 0 }
   0x4   :  { %23 = vsyncpa [#allocation4], 0 }
   0x5   :  { %24 = vsyncpa [#allocation16], 0  ;;  %s3202_s25 = smov [#allocation5]  }
   0x6   :  { %s43_s26 = sshll.u32 %s3202_s25, 4  ;;  %s44_s26 = int_to_ptr.vmem [resolvable:$true] %s43_s26 }
   0x7   :  { %s3018_s27 = scalar_lea.vmem %s44_s26, 16  ;;  %s3022_s28 = scalar_lea.vmem %s44_s26, 32 }
   0x8   :  { %p3019_p0 = scmp.ne.s32.totalorder %s44_s26, %s3018_s27  ;;  %p3023_p1 = scmp.lt.s32.totalorder %s44_s26, %s44_s26 }
   0x9   :  { %p3024_p2 = scmp.lt.s32.totalorder %s3022_s28, %s3018_s27 }
   0xb   :  { %p3025_p3 = por %p3024_p2, %p3023_p1 }
   0xd   :  { %p3026_p4 = pnand %p3025_p3, %p3019_p0 }
   0xf   :  { %3029 = shalt.err (!%p3026_p4)
}
  0x10   :  { %46 = dma.hbm_to_vmem [thread:$0]  %s3796_s2, 16, %s44_s26, [#allocation6]  }
  0x11   :  { %s3203_s14 = smov [#allocation8]   ;;  %s3204_s16 = smov [#allocation11]  }
  0x12   :  { %s66_s15 = sshll.u32 %s3203_s14, 4  ;;  %s89_s17 = sshll.u32 %s3204_s16, 4  ;;  %s67_s15 = int_to_ptr.vmem [resolvable:$true] %s66_s15  ;;  %s90_s17 = int_to_ptr.vmem [resolvable:$true] %s89_s17 }
  0x13   :  { %s3038_s18 = scalar_lea.vmem %s67_s15, 512  ;;  %p3043_p6 = scmp.lt.s32.totalorder %s67_s15, %s67_s15 }
  0x14   :  { %p3039_p5 = scmp.ne.s32.totalorder %s67_s15, %s3038_s18  ;;  %p3044_p7 = scmp.lt.s32.totalorder %s3038_s18, %s3038_s18 }
  0x16   :  { %p3045_p8 = por %p3044_p7, %p3043_p6 }
  0x18   :  { %p3046_p9 = pnand %p3045_p8, %p3039_p5 }
  0x1a   :  { %3049 = shalt.err (!%p3046_p9)
}
  0x1b   :  { %s3205_s19 = smov 128   ;;  %s3206_s20 = smov 8  }
  0x1c   :  { %72 = dma.hbm_to_vmem [thread:$0]  %s3799_s5, 512, %s67_s15, [#allocation9], %s3205_s19, %s3205_s19, %s3206_s20  }
  0x1d   :  { %s3058_s2 = scalar_lea.vmem %s90_s17, 16  ;;  %s3062_s23 = scalar_lea.vmem %s90_s17, 32 }
  0x1e   :  { %p3059_p10 = scmp.ne.s32.totalorder %s90_s17, %s3058_s2  ;;  %p3063_p11 = scmp.lt.s32.totalorder %s90_s17, %s90_s17 }
  0x1f   :  { %p3064_p12 = scmp.lt.s32.totalorder %s3062_s23, %s3058_s2 }
  0x21   :  { %p3065_p13 = por %p3064_p12, %p3063_p11 }
  0x23   :  { %p3066_p0 = pnand %p3065_p13, %p3059_p10 }
  0x25   :  { %3069 = shalt.err (!%p3066_p0)
}
  0x26   :  { %92 = dma.hbm_to_vmem [thread:$0]  %s3801_s7, 16, %s90_s17, [#allocation12]  }
  0x27   :  { %s3207_s26 = smov [#allocation2]   ;;  %s3208_s28 = smov [#allocation7]  }
  0x28   :  { %s31_s27 = sshll.u32 %s3207_s26, 4  ;;  %s54_s29 = sshll.u32 %s3208_s28, 4  ;;  %s32_s27 = int_to_ptr.vmem [resolvable:$true] %s31_s27  ;;  %s55_s29 = int_to_ptr.vmem [resolvable:$true] %s54_s29 }
  0x29   :  { %s3078_s30 = scalar_lea.vmem %s32_s27, 128  ;;  %p3083_p2 = scmp.lt.s32.totalorder %s32_s27, %s32_s27 }
  0x2a   :  { %p3079_p1 = scmp.ne.s32.totalorder %s32_s27, %s3078_s30  ;;  %p3084_p3 = scmp.lt.s32.totalorder %s3078_s30, %s3078_s30 }
  0x2c   :  { %p3085_p4 = por %p3084_p3, %p3083_p2 }
  0x2e   :  { %p3086_p5 = pnand %p3085_p4, %p3079_p1 }
  0x30   :  { %3089 = shalt.err (!%p3086_p5)
}
  0x31   :  { %34 = dma.hbm_to_vmem [thread:$0]  %s3794_s0, 128, %s32_s27, [#allocation3]  }
  0x32   :  { %s3098_s15 = scalar_lea.vmem %s55_s29, 512  ;;  %p3103_p7 = scmp.lt.s32.totalorder %s55_s29, %s55_s29 }
  0x33   :  { %p3099_p6 = scmp.ne.s32.totalorder %s55_s29, %s3098_s15  ;;  %p3104_p8 = scmp.lt.s32.totalorder %s3098_s15, %s3098_s15 }
  0x35   :  { %p3105_p9 = por %p3104_p8, %p3103_p7 }
  0x37   :  { %p3106_p10 = pnand %p3105_p9, %p3099_p6 }
  0x39   :  { %3109 = shalt.err (!%p3106_p10)
}
  0x3a   :  { %60 = dma.hbm_to_vmem [thread:$0]  %s3798_s4, 512, %s55_s29, [#allocation6], %s3205_s19, %s3205_s19, %s3206_s20  }
  0x3b   :  { %s3209_s17 = smov [#allocation10]   ;;  %s3210_s21 = smov [#allocation13]  }
  0x3c   :  { %s79_s18 = sshll.u32 %s3209_s17, 4  ;;  %s99_s0 = sshll.u32 %s3210_s21, 4  ;;  %s80_s18 = int_to_ptr.vmem [resolvable:$true] %s79_s18  ;;  %s100_s0 = int_to_ptr.vmem [resolvable:$true] %s99_s0 }
  0x3d   :  { %s3118_s22 = scalar_lea.vmem %s80_s18, 16  ;;  %s3122_s2 = scalar_lea.vmem %s80_s18, 32 }
  0x3e   :  { %p3119_p11 = scmp.ne.s32.totalorder %s80_s18, %s3118_s22  ;;  %p3123_p12 = scmp.lt.s32.totalorder %s80_s18, %s80_s18 }
  0x3f   :  { %p3124_p13 = scmp.lt.s32.totalorder %s3122_s2, %s3118_s22 }
  0x41   :  { %p3125_p0 = por %p3124_p13, %p3123_p12 }
  0x43   :  { %p3126_p1 = pnand %p3125_p0, %p3119_p11 }
  0x45   :  { %3129 = shalt.err (!%p3126_p1)
}
  0x46   :  { %82 = dma.hbm_to_vmem [thread:$0]  %s3800_s6, 16, %s80_s18, [#allocation9]  }
  0x47   :  { %s3138_s25 = scalar_lea.vmem %s100_s0, 16  ;;  %s3142_s4 = scalar_lea.vmem %s100_s0, 32 }
  0x48   :  { %p3139_p2 = scmp.ne.s32.totalorder %s100_s0, %s3138_s25  ;;  %p3143_p3 = scmp.lt.s32.totalorder %s100_s0, %s100_s0 }
  0x49   :  { %p3144_p4 = scmp.lt.s32.totalorder %s3142_s4, %s3138_s25 }
  0x4b   :  { %p3145_p5 = por %p3144_p4, %p3143_p3 }
  0x4d   :  { %p3146_p6 = pnand %p3145_p5, %p3139_p2 }
  0x4f   :  { %3149 = shalt.err (!%p3146_p6)
}
  0x50   :  { %102 = dma.hbm_to_vmem [thread:$0]  %s3802_s8, 16, %s100_s0, [#allocation12]  }
  0x51   :  { %3190 = dma.done.wait [#allocation3], 128  }
  0x52   :  { %3191 = vsyncadd [#allocation3], 4294967168 }
  0x53   :  { %3192 = dma.done.wait [#allocation6], 528  }
  0x54   :  { %3193 = vsyncadd [#allocation6], 4294966768 }
  0x55   :  { %3194 = dma.done.wait [#allocation9], 528  }
  0x56   :  { %3195 = vsyncadd [#allocation9], 4294966768 }
  0x57   :  { %3196 = dma.done.wait [#allocation12], 32  }
  0x58   :  { %3197 = vsyncadd [#allocation12], 4294967264  ;;  %v3211_v0 = vmov 0.0   ;;  %vm3212_vm0 = vmmov 0   ;;  %v3325_v1 = vld [vmem:[%s3797_s3 + $0x18] sm:$0xff]  ;;  %v130_v2 = vld [vmem:[%s3795_s1 + $0x8] sm:$0xff] }
  0x59   :  { %2626 = vmatprep.subr.mxu1 %v3211_v0  ;;  %2619 = vmatprep.subr.mxu0 %v3211_v0  ;;  %v3333_v3 = vld [vmem:[%s3797_s3 + $0x10] sm:$0xff]  ;;  %v129_v4 = vld [vmem:[%s3795_s1] sm:$0xff]  ;;  %vm138_vm1 = vcmask 130048   ;;  %v3344_v6 = vld [vmem:[%s3797_s3 + $0x8] sm:$0xff]  ;;  %s3214_s16 = smov 32   ;;  %s3215_s17 = smov 96  }
  0x5a   :  { %2623 = vmatprep.mubr.msk.f32.mxu0 %vm3212_vm0, %v3211_v0  ;;  %2634 = vmatprep.mubr.msk.f32.mxu1 %vm3212_vm0, %v3211_v0  ;;  %v128_v5 = vld [vmem:[#allocation2] sm:$0xff]  ;;  %v3372_v12 = vld [vmem:[#allocation7 + $0x8] sm:$0xff]  ;;  %v3380_v14 = vld [vmem:[#allocation7] sm:$0xff]  ;;  %vm227_vm2 = vcmask 261120   ;;  %vm2279_vm3 = vcmask 1040384   ;;  %vm2281_vm4 = vcmask 1041408  }
  0x5b   :  { %2627 = vmatpush3.msra.mxu1 %v3325_v1  ;;  %2620 = vmatpush3.msra.mxu0 %v130_v2  ;;  %v3347_v7 = vld [vmem:[#allocation7 + $0x18] sm:$0xff]  ;;  %v3363_v10 = vld [vmem:[#allocation7 + $0x10] sm:$0xff]  ;;  %v3375_v13 = vld [vmem:[#allocation8 + $0x8] sm:$0xff]  ;;  %vm2283_vm5 = vcmask 1042432   ;;  %vm2285_vm6 = vcmask 1043456   ;;  %vm2287_vm7 = vcmask 1044480  }
  0x5c   :  { %2628 = vmatprep.subr.mxu1 %v3211_v0  ;;  %2621 = vmatprep.subr.mxu0 %v3211_v0  ;;  %v3353_v8 = vld [vmem:[%s3797_s3] sm:$0xff]  ;;  %v3383_v15 = vld [vmem:[#allocation8] sm:$0xff]  ;;  %v2450_v16 = vld [vmem:[#allocation5] ss:$0 sm:$0xff]  ;;  %s3213_s3 = smov 64   ;;  %vm2289_vm8 = vcmask 1045504  }
  0x5d   :  { %2629 = vmatpush3.msra.mxu1 %v3333_v3  ;;  %2622 = vmatpush3.msra.mxu0 %v129_v4  ;;  %v3358_v9 = vld [vmem:[#allocation8 + $0x18] sm:$0xff]  ;;  %v3367_v11 = vld [vmem:[#allocation8 + $0x10] sm:$0xff]  ;;  %v3417_v19 = vld [vmem:[#allocation10] sm:$0x1]  ;;  %vm2291_vm9 = vcmask 1046528   ;;  %vm2384_vm10 = vcmask 80960  }
  0x5e   :  { %2630 = vmatprep.subr.mxu1 %v3211_v0  ;;  %2624 = vmatmul.mubr.msk.f32.vlgmr.msra.gmra.mxu0 %vm138_vm1, %v128_v5  ;;  %v3423_v32 = vld [vmem:[#allocation13] sm:$0x1]  ;;  %v3426_v35 = vld [vmem:[#allocation11] sm:$0x1]  ;;  %vm2382_vm11 = vcmask 64512   ;;  %vm2412_vm12 = vcmask 261127  }
  0x5f   :  { %2631 = vmatpush3.msra.mxu1 %v3344_v6  ;;  %2637 = vmatprep.subr.mxu0 %v3211_v0  ;;  %vm2395_vm13 = vcmask 15360   ;;  %s3217_s19 = smov [#allocation14]   ;;  %s3218_s6 = smov [#allocation15]  }
  0x60   :  { %2632 = vmatprep.subr.mxu1 %v3211_v0  ;;  %2638 = vmatpush3.msra.mxu0 %v3347_v7  ;;  %s2420_s20 = sshll.u32 %s3217_s19, 4  ;;  %s2432_s8 = sshll.u32 %s3218_s6, 4  ;;  %s2421_s20 = int_to_ptr.vmem [resolvable:$true] %s2420_s20  ;;  %s2433_s8 = int_to_ptr.vmem [resolvable:$true] %s2432_s8 }
  0x61   :  { %2633 = vmatpush3.msra.mxu1 %v3353_v8  ;;  %2639 = vmatprep.subr.mxu0 %v3211_v0  ;;  %s3150_s26 = scalar_lea.vmem %s2421_s20, 128  ;;  %p3155_p8 = scmp.lt.s32.totalorder %s2421_s20, %s2421_s20 }
  0x62   :  { %2635 = vmatmul.mubr.f32.vlgmr.msra.gmra.mxu1 %v3211_v0  ;;  %2648 = vmatprep.subr.mxu1 %v3211_v0  ;;  %p3151_p7 = scmp.ne.s32.totalorder %s2421_s20, %s3150_s26  ;;  %p3156_p9 = scmp.lt.s32.totalorder %s3150_s26, %s3150_s26 }
  0x63   :  { %2649 = vmatpush3.msra.mxu1 %v3358_v9  ;;  %2656 = vmatprep.mubr.msk.f32.mxu1 %vm3212_vm0, %v3211_v0 }
  0x64   :  { %2650 = vmatprep.subr.mxu1 %v3211_v0  ;;  %2640 = vmatpush3.msra.mxu0 %v3363_v10  ;;  %p3157_p10 = por %p3156_p9, %p3155_p8 }
  0x65   :  { %2651 = vmatpush3.msra.mxu1 %v3367_v11  ;;  %2641 = vmatprep.subr.mxu0 %v3211_v0 }
  0x66   :  { %2652 = vmatprep.subr.mxu1 %v3211_v0  ;;  %2642 = vmatpush3.msra.mxu0 %v3372_v12  ;;  %p3158_p11 = pnand %p3157_p10, %p3151_p7 }
  0x67   :  { %2653 = vmatpush3.msra.mxu1 %v3375_v13  ;;  %2643 = vmatprep.subr.mxu0 %v3211_v0 }
  0x68   :  { %2654 = vmatprep.subr.mxu1 %v3211_v0  ;;  %2644 = vmatpush3.msra.mxu0 %v3380_v14 }
  0x69   :  { %2655 = vmatpush3.msra.mxu1 %v3383_v15  ;;  %2645 = vmatprep.mubr.msk.f32.mxu0 %vm3212_vm0, %v3211_v0 }
  0x6a   :  { %2657 = vmatmul.mubr.f32.vlgmr.msra.gmra.mxu1 %v3211_v0  ;;  %2646 = vmatmul.mubr.f32.vlgmr.msra.gmra.mxu0 %v3211_v0 }
  0x6b   :  { %2659 = vmatprep.subr.mxu0 %v3211_v0  ;;  %2670 = vmatprep.subr.mxu1 %v3211_v0 }
  0x6c   :  { %2660 = vmatpush3.msra.mxu0 %v3325_v1  ;;  %2671 = vmatpush3.msra.mxu1 %v3347_v7 }
  0x6d   :  { %2661 = vmatprep.subr.mxu0 %v3211_v0  ;;  %2672 = vmatprep.subr.mxu1 %v3211_v0 }
  0x6e   :  { %2662 = vmatpush3.msra.mxu0 %v3333_v3  ;;  %2673 = vmatpush3.msra.mxu1 %v3363_v10 }
  0x6f   :  { %2663 = vmatprep.subr.mxu0 %v3211_v0  ;;  %2674 = vmatprep.subr.mxu1 %v3211_v0 }
  0x70   :  { %2664 = vmatpush3.msra.mxu0 %v3344_v6  ;;  %2675 = vmatpush3.msra.mxu1 %v3372_v12 }
  0x71   :  { %2665 = vmatprep.subr.mxu0 %v3211_v0  ;;  %2676 = vmatprep.subr.mxu1 %v3211_v0 }
  0x72   :  { %2666 = vmatpush3.msra.mxu0 %v3353_v8  ;;  %2667 = vmatprep.mubr.msk.f32.mxu0 %vm3212_vm0, %v3211_v0 }
  0x73   :  { %2677 = vmatpush3.msra.mxu1 %v3380_v14  ;;  %2678 = vmatprep.mubr.msk.f32.mxu1 %vm3212_vm0, %v3211_v0 }
  0x74   :  { %2681 = vmatprep.subr.mxu0 %v3211_v0  ;;  %2692 = vmatprep.subr.mxu1 %v3211_v0 }
 0x11e   :  { %v208_v17 = vpop.f32.mrf.mxu0 }
 0x11f   :  { %v3419_v20 = vadd.f32 %v2450_v16, %v208_v17 }
 0x120   :  { %v2625_v18 = vpop.f32.mrf.mxu0 }
 0x122   :  { %v297_v21 = vpop.f32.mrf.mxu1 }
 0x123   :  { %v298_v22 = vadd.f32 %v297_v21, %v3417_v19 }
 0x124   :  { %v2636_v23 = vpop.f32.mrf.mxu1 }
 0x125   :  { %v441_v24 = vadd.f32 %v298_v22, %v3419_v20 }
 0x127   :  { %v2452_v25 = vmul.f32 -1.442695, %v441_v24 }
 0x129   :  { %2918 = vpow2.f32 %v2452_v25 }
 0x12a   :  { %v437_v26 = vpop.f32.mrf.mxu1  ;;  %v367_v27 = vpop.f32.mrf.mxu0 }
 0x12b   :  { %v438_v33 = vadd.f32 %v437_v26, %v3423_v32  ;;  %v368_v37 = vadd.f32 %v367_v27, %v3426_v35 }
 0x12c   :  { %v2658_v28 = vpop.f32.mrf.mxu1  ;;  %v2647_v29 = vpop.f32.mrf.mxu0 }
 0x136   :  { %v2919_v30 = vpop.eup %2918 }
 0x137   :  { %v445_v31 = vadd.f32 1.0, %v2919_v30 }
 0x139   :  { %2920 = vrcp.f32 %v445_v31 }
 0x146   :  { %v2921_v34 = vpop.eup %2920 }
 0x147   :  { %v459_v36 = vmul.f32 %v2921_v34, %v438_v33 }
 0x149   :  { %461 = vrot.lane.b32.xlu0 %v459_v36, %s3213_s3 }
 0x14d   :  { %449 = vrot.lane.b32.xlu0 %v368_v37, %s3214_s16 }
 0x1bb   :  { %v462_v38 = vpop.permute.xlu0 %461 }
 0x1bc   :  { %v464_v39 = vadd.f32 %v462_v38, %v3419_v20 }
 0x1be   :  { %2922 = vtanh.f32 %v464_v39 }
 0x1bf   :  { %v450_v41 = vpop.permute.xlu0 %449 }
 0x1c0   :  { %v452_v42 = vadd.f32 %v450_v41, %v3419_v20 }
 0x1c2   :  { %v2453_v43 = vmul.f32 -1.442695, %v452_v42 }
 0x1c4   :  { %2924 = vpow2.f32 %v2453_v43 }
 0x1cb   :  { %v2923_v40 = vpop.eup %2922 }
 0x1cc   :  { %468 = vrot.lane.b32.xlu1 %v2923_v40, %s3215_s17 }
 0x1d1   :  { %v2925_v44 = vpop.eup %2924 }
 0x1d2   :  { %v456_v45 = vadd.f32 1.0, %v2925_v44 }
 0x1d4   :  { %2926 = vrcp.f32 %v456_v45 }
 0x1e1   :  { %v2927_v46 = vpop.eup %2926 }
 0x1e2   :  { %v466_v47 = vsub.f32 1.0, %v2927_v46  ;;  %v472_v50 = vmul.f32 0.0, %v2927_v46 }
 0x23e   :  { %v469_v48 = vpop.permute.xlu1 %468 }
 0x23f   :  { %v471_v49 = vmul.f32 %v469_v48, %v466_v47 }
 0x241   :  { %v3434_v51 = vadd.f32 %v472_v50, %v471_v49 }
 0x243   :  { %475 = vrot.lane.b32.xlu1 %v3434_v51, %s3215_s17  ;;  %v727_v33 = vrot.slane %v3434_v51, 7 }
 0x2b5   :  { %v476_v52 = vpop.permute.xlu1 %475 }
 0x2b6   :  { %2668 = vmatmul.mubr.msk.f32.vlgmr.msra.gmra.mxu0 %vm227_vm2, %v476_v52  ;;  %2679 = vmatmul.mubr.msk.f32.vlgmr.msra.gmra.mxu1 %vm227_vm2, %v476_v52 }
 0x2b7   :  { %2682 = vmatpush3.msra.mxu0 %v3358_v9  ;;  %2689 = vmatprep.mubr.msk.f32.mxu0 %vm3212_vm0, %v3211_v0 }
 0x2b8   :  { %2683 = vmatprep.subr.mxu0 %v3211_v0  ;;  %2693 = vmatpush3.msra.mxu1 %v3325_v1 }
 0x2b9   :  { %2684 = vmatpush3.msra.mxu0 %v3367_v11  ;;  %2694 = vmatprep.subr.mxu1 %v3211_v0 }
 0x2ba   :  { %2685 = vmatprep.subr.mxu0 %v3211_v0  ;;  %2695 = vmatpush3.msra.mxu1 %v3333_v3 }
 0x2bb   :  { %2686 = vmatpush3.msra.mxu0 %v3375_v13  ;;  %2696 = vmatprep.subr.mxu1 %v3211_v0 }
 0x2bc   :  { %2687 = vmatprep.subr.mxu0 %v3211_v0  ;;  %2697 = vmatpush3.msra.mxu1 %v3344_v6 }
 0x2bd   :  { %2688 = vmatpush3.msra.mxu0 %v3383_v15  ;;  %2698 = vmatprep.subr.mxu1 %v3211_v0 }
 0x2be   :  { %2690 = vmatmul.mubr.msk.f32.vlgmr.msra.gmra.mxu0 %vm227_vm2, %v476_v52  ;;  %2703 = vmatprep.subr.mxu0 %v3211_v0 }
 0x2bf   :  { %2704 = vmatpush3.msra.mxu0 %v3347_v7  ;;  %2699 = vmatpush3.msra.mxu1 %v3353_v8 }
 0x2c0   :  { %2705 = vmatprep.subr.mxu0 %v3211_v0  ;;  %2700 = vmatprep.mubr.msk.f32.mxu1 %vm3212_vm0, %v3211_v0 }
 0x2c1   :  { %2706 = vmatpush3.msra.mxu0 %v3363_v10  ;;  %2711 = vmatprep.mubr.msk.f32.mxu0 %vm3212_vm0, %v3211_v0 }
 0x2c2   :  { %2707 = vmatprep.subr.mxu0 %v3211_v0  ;;  %2714 = vmatprep.subr.mxu1 %v3211_v0 }
 0x2c3   :  { %2708 = vmatpush3.msra.mxu0 %v3372_v12 }
 0x2c4   :  { %2709 = vmatprep.subr.mxu0 %v3211_v0 }
 0x2c5   :  { %2710 = vmatpush3.msra.mxu0 %v3380_v14 }
 0x2c6   :  { %2725 = vmatprep.subr.mxu0 %v3211_v0 }
 0x376   :  { %v545_v53 = vpop.f32.mrf.mxu0  ;;  %v615_v54 = vpop.f32.mrf.mxu1 }
 0x377   :  { %v546_v55 = vadd.f32 %v545_v53, %v3417_v19  ;;  %v616_v56 = vadd.f32 %v615_v54, %v3426_v35 }
 0x378   :  { %v2669_v57 = vpop.f32.mrf.mxu0  ;;  %v2680_v58 = vpop.f32.mrf.mxu1 }
 0x379   :  { %v690_v59 = vrot.slane %v546_v55, 7  ;;  %v700_v60 = vrot.slane %v616_v56, 7 }
 0x37b   :  { %v692_v61 = vadd.f32 %v690_v59, %v3419_v20  ;;  %701 = vrot.lane.b32.xlu1 %v700_v60, %s3214_s16 }
 0x37d   :  { %v2457_v62 = vmul.f32 -1.442695, %v692_v61 }
 0x37e   :  { %v685_v63 = vpop.f32.mrf.mxu0 }
 0x37f   :  { %2928 = vpow2.f32 %v2457_v62  ;;  %v686_v16 = vadd.f32 %v685_v63, %v3423_v32 }
 0x380   :  { %v2691_v2 = vpop.f32.mrf.mxu0 }
 0x381   :  { %v712_v17 = vrot.slane %v686_v16, 7 }
 0x38c   :  { %v2929_v4 = vpop.eup %2928 }
 0x38d   :  { %v696_v5 = vadd.f32 1.0, %v2929_v4 }
 0x38f   :  { %2930 = vrcp.f32 %v696_v5 }
 0x39c   :  { %v2931_v18 = vpop.eup %2930 }
 0x39d   :  { %v714_v21 = vmul.f32 %v2931_v18, %v712_v17 }
 0x39f   :  { %716 = vrot.lane.b32.xlu0 %v714_v21, %s3213_s3 }
 0x3ed   :  { %v702_v25 = vpop.permute.xlu1 %701 }
 0x3ee   :  { %v704_v26 = vadd.f32 %v702_v25, %v3419_v20 }
 0x3f0   :  { %v2458_v27 = vmul.f32 -1.442695, %v704_v26 }
 0x411   :  { %v717_v22 = vpop.permute.xlu0 %716 }
 0x412   :  { %v719_v23 = vadd.f32 %v717_v22, %v3419_v20 }
 0x414   :  { %2932 = vtanh.f32 %v719_v23 }
 0x415   :  { %2934 = vpow2.f32 %v2458_v27 }
 0x421   :  { %v2933_v24 = vpop.eup %2932 }
 0x422   :  { %723 = vrot.lane.b32.xlu0 %v2933_v24, %s3215_s17  ;;  %v2935_v28 = vpop.eup %2934 }
 0x423   :  { %v708_v29 = vadd.f32 1.0, %v2935_v28 }
 0x425   :  { %2936 = vrcp.f32 %v708_v29 }
 0x432   :  { %v2937_v30 = vpop.eup %2936 }
 0x433   :  { %v721_v31 = vsub.f32 1.0, %v2937_v30  ;;  %v729_v36 = vmul.f32 %v2937_v30, %v727_v33 }
 0x494   :  { %v724_v34 = vpop.permute.xlu0 %723 }
 0x495   :  { %v726_v37 = vmul.f32 %v724_v34, %v721_v31 }
 0x497   :  { %v3481_v38 = vadd.f32 %v729_v36, %v726_v37 }
 0x499   :  { %v732_v39 = vrot.slane %v3481_v38, 1  ;;  %v985_v18 = vrot.slane %v3481_v38, 7  ;;  %v2280_v26 = vsel %vm2279_vm3, %v3434_v51, %v3481_v38 }
 0x49b   :  { %733 = vrot.lane.b32.xlu1 %v732_v39, %s3215_s17 }
 0x50d   :  { %v734_v40 = vpop.permute.xlu1 %733 }
 0x50e   :  { %2701 = vmatmul.mubr.msk.f32.vlgmr.msra.gmra.mxu1 %vm227_vm2, %v734_v40  ;;  %2712 = vmatmul.mubr.msk.f32.vlgmr.msra.gmra.mxu0 %vm227_vm2, %v734_v40 }
 0x50f   :  { %2715 = vmatpush3.msra.mxu1 %v3358_v9  ;;  %2722 = vmatprep.mubr.msk.f32.mxu1 %vm3212_vm0, %v3211_v0 }
 0x510   :  { %2716 = vmatprep.subr.mxu1 %v3211_v0  ;;  %2726 = vmatpush3.msra.mxu0 %v3325_v1 }
 0x511   :  { %2717 = vmatpush3.msra.mxu1 %v3367_v11  ;;  %2727 = vmatprep.subr.mxu0 %v3211_v0 }
 0x512   :  { %2718 = vmatprep.subr.mxu1 %v3211_v0  ;;  %2728 = vmatpush3.msra.mxu0 %v3333_v3 }
 0x513   :  { %2719 = vmatpush3.msra.mxu1 %v3375_v13  ;;  %2729 = vmatprep.subr.mxu0 %v3211_v0 }
 0x514   :  { %2720 = vmatprep.subr.mxu1 %v3211_v0  ;;  %2730 = vmatpush3.msra.mxu0 %v3344_v6 }
 0x515   :  { %2721 = vmatpush3.msra.mxu1 %v3383_v15  ;;  %2731 = vmatprep.subr.mxu0 %v3211_v0 }
 0x516   :  { %2723 = vmatmul.mubr.msk.f32.vlgmr.msra.gmra.mxu1 %vm227_vm2, %v734_v40  ;;  %2736 = vmatprep.subr.mxu1 %v3211_v0 }
 0x517   :  { %2737 = vmatpush3.msra.mxu1 %v3347_v7  ;;  %2732 = vmatpush3.msra.mxu0 %v3353_v8 }
 0x518   :  { %2738 = vmatprep.subr.mxu1 %v3211_v0  ;;  %2733 = vmatprep.mubr.msk.f32.mxu0 %vm3212_vm0, %v3211_v0 }
 0x519   :  { %2739 = vmatpush3.msra.mxu1 %v3363_v10  ;;  %2744 = vmatprep.mubr.msk.f32.mxu1 %vm3212_vm0, %v3211_v0 }
 0x51a   :  { %2740 = vmatprep.subr.mxu1 %v3211_v0  ;;  %2747 = vmatprep.subr.mxu0 %v3211_v0 }
 0x51b   :  { %2741 = vmatpush3.msra.mxu1 %v3372_v12 }
 0x51c   :  { %2742 = vmatprep.subr.mxu1 %v3211_v0 }
 0x51d   :  { %2743 = vmatpush3.msra.mxu1 %v3380_v14 }
 0x51e   :  { %2758 = vmatprep.subr.mxu1 %v3211_v0 }
 0x5ce   :  { %v803_v41 = vpop.f32.mrf.mxu1  ;;  %v873_v42 = vpop.f32.mrf.mxu0 }
 0x5cf   :  { %v804_v43 = vadd.f32 %v803_v41, %v3417_v19  ;;  %v874_v44 = vadd.f32 %v873_v42, %v3426_v35 }
 0x5d0   :  { %v2702_v45 = vpop.f32.mrf.mxu1  ;;  %v2713_v46 = vpop.f32.mrf.mxu0 }
 0x5d1   :  { %v948_v47 = vrot.slane %v804_v43, 6  ;;  %v958_v48 = vrot.slane %v874_v44, 6 }
 0x5d3   :  { %v950_v49 = vadd.f32 %v948_v47, %v3419_v20  ;;  %959 = vrot.lane.b32.xlu1 %v958_v48, %s3214_s16 }
 0x5d5   :  { %v2462_v50 = vmul.f32 -1.442695, %v950_v49 }
 0x5d6   :  { %v943_v52 = vpop.f32.mrf.mxu1 }
 0x5d7   :  { %2938 = vpow2.f32 %v2462_v50  ;;  %v944_v56 = vadd.f32 %v943_v52, %v3423_v32 }
 0x5d8   :  { %v2724_v53 = vpop.f32.mrf.mxu1 }
 0x5d9   :  { %v970_v57 = vrot.slane %v944_v56, 6 }
 0x5e4   :  { %v2939_v54 = vpop.eup %2938 }
 0x5e5   :  { %v954_v55 = vadd.f32 1.0, %v2939_v54 }
 0x5e7   :  { %2940 = vrcp.f32 %v954_v55 }
 0x5f4   :  { %v2941_v58 = vpop.eup %2940 }
 0x5f5   :  { %v972_v59 = vmul.f32 %v2941_v58, %v970_v57 }
 0x5f7   :  { %974 = vrot.lane.b32.xlu0 %v972_v59, %s3213_s3 }
 0x645   :  { %v960_v63 = vpop.permute.xlu1 %959 }
 0x646   :  { %v962_v2 = vadd.f32 %v960_v63, %v3419_v20 }
 0x648   :  { %v2463_v4 = vmul.f32 -1.442695, %v962_v2 }
 0x669   :  { %v975_v60 = vpop.permute.xlu0 %974 }
 0x66a   :  { %v977_v61 = vadd.f32 %v975_v60, %v3419_v20 }
 0x66c   :  { %2942 = vtanh.f32 %v977_v61 }
 0x66d   :  { %2944 = vpow2.f32 %v2463_v4 }
 0x679   :  { %v2943_v62 = vpop.eup %2942 }
 0x67a   :  { %981 = vrot.lane.b32.xlu0 %v2943_v62, %s3215_s17  ;;  %v2945_v5 = vpop.eup %2944 }
 0x67b   :  { %v966_v16 = vadd.f32 1.0, %v2945_v5 }
 0x67d   :  { %2946 = vrcp.f32 %v966_v16 }
 0x68a   :  { %v2947_v17 = vpop.eup %2946 }
 0x68b   :  { %v979_v21 = vsub.f32 1.0, %v2947_v17  ;;  %v987_v24 = vmul.f32 %v2947_v17, %v985_v18 }
 0x6ec   :  { %v982_v22 = vpop.permute.xlu0 %981 }
 0x6ed   :  { %v984_v23 = vmul.f32 %v982_v22, %v979_v21 }
 0x6ef   :  { %v3528_v25 = vadd.f32 %v987_v24, %v984_v23 }
 0x6f1   :  { %v3533_v27 = vsel %vm2281_vm4, %v2280_v26, %v3528_v25  ;;  %v990_v28 = vrot.slane %v3528_v25, 2  ;;  %v1243_v60 = vrot.slane %v3528_v25, 7 }
 0x6f3   :  { %991 = vrot.lane.b32.xlu1 %v990_v28, %s3215_s17 }
 0x765   :  { %v992_v29 = vpop.permute.xlu1 %991 }
 0x766   :  { %2734 = vmatmul.mubr.msk.f32.vlgmr.msra.gmra.mxu0 %vm227_vm2, %v992_v29  ;;  %2745 = vmatmul.mubr.msk.f32.vlgmr.msra.gmra.mxu1 %vm227_vm2, %v992_v29 }
 0x767   :  { %2748 = vmatpush3.msra.mxu0 %v3358_v9  ;;  %2755 = vmatprep.mubr.msk.f32.mxu0 %vm3212_vm0, %v3211_v0 }
 0x768   :  { %2749 = vmatprep.subr.mxu0 %v3211_v0  ;;  %2759 = vmatpush3.msra.mxu1 %v3325_v1 }
 0x769   :  { %2750 = vmatpush3.msra.mxu0 %v3367_v11  ;;  %2760 = vmatprep.subr.mxu1 %v3211_v0 }
 0x76a   :  { %2751 = vmatprep.subr.mxu0 %v3211_v0  ;;  %2761 = vmatpush3.msra.mxu1 %v3333_v3 }
 0x76b   :  { %2752 = vmatpush3.msra.mxu0 %v3375_v13  ;;  %2762 = vmatprep.subr.mxu1 %v3211_v0 }
 0x76c   :  { %2753 = vmatprep.subr.mxu0 %v3211_v0  ;;  %2763 = vmatpush3.msra.mxu1 %v3344_v6 }
 0x76d   :  { %2754 = vmatpush3.msra.mxu0 %v3383_v15  ;;  %2764 = vmatprep.subr.mxu1 %v3211_v0 }
 0x76e   :  { %2756 = vmatmul.mubr.msk.f32.vlgmr.msra.gmra.mxu0 %vm227_vm2, %v992_v29  ;;  %2769 = vmatprep.subr.mxu0 %v3211_v0 }
 0x76f   :  { %2770 = vmatpush3.msra.mxu0 %v3347_v7  ;;  %2765 = vmatpush3.msra.mxu1 %v3353_v8 }
 0x770   :  { %2771 = vmatprep.subr.mxu0 %v3211_v0  ;;  %2766 = vmatprep.mubr.msk.f32.mxu1 %vm3212_vm0, %v3211_v0 }
 0x771   :  { %2772 = vmatpush3.msra.mxu0 %v3363_v10  ;;  %2777 = vmatprep.mubr.msk.f32.mxu0 %vm3212_vm0, %v3211_v0 }
 0x772   :  { %2773 = vmatprep.subr.mxu0 %v3211_v0  ;;  %2780 = vmatprep.subr.mxu1 %v3211_v0 }
 0x773   :  { %2774 = vmatpush3.msra.mxu0 %v3372_v12 }
 0x774   :  { %2775 = vmatprep.subr.mxu0 %v3211_v0 }
 0x775   :  { %2776 = vmatpush3.msra.mxu0 %v3380_v14 }
 0x776   :  { %2791 = vmatprep.subr.mxu0 %v3211_v0 }
 0x826   :  { %v1061_v51 = vpop.f32.mrf.mxu0  ;;  %v1131_v30 = vpop.f32.mrf.mxu1 }
 0x827   :  { %v1062_v31 = vadd.f32 %v1061_v51, %v3417_v19  ;;  %v1132_v33 = vadd.f32 %v1131_v30, %v3426_v35 }
 0x828   :  { %v2735_v34 = vpop.f32.mrf.mxu0  ;;  %v2746_v36 = vpop.f32.mrf.mxu1 }
 0x829   :  { %v1206_v37 = vrot.slane %v1062_v31, 5  ;;  %v1216_v38 = vrot.slane %v1132_v33, 5 }
 0x82b   :  { %v1208_v39 = vadd.f32 %v1206_v37, %v3419_v20  ;;  %1217 = vrot.lane.b32.xlu1 %v1216_v38, %s3214_s16 }
 0x82d   :  { %v2467_v40 = vmul.f32 -1.442695, %v1208_v39 }
 0x82e   :  { %v1201_v41 = vpop.f32.mrf.mxu0 }
 0x82f   :  { %2948 = vpow2.f32 %v2467_v40  ;;  %v1202_v45 = vadd.f32 %v1201_v41, %v3423_v32 }
 0x830   :  { %v2757_v42 = vpop.f32.mrf.mxu0 }
 0x831   :  { %v1228_v46 = vrot.slane %v1202_v45, 5 }
 0x83c   :  { %v2949_v43 = vpop.eup %2948 }
 0x83d   :  { %v1212_v44 = vadd.f32 1.0, %v2949_v43 }
 0x83f   :  { %2950 = vrcp.f32 %v1212_v44 }
 0x84c   :  { %v2951_v47 = vpop.eup %2950 }
 0x84d   :  { %v1230_v48 = vmul.f32 %v2951_v47, %v1228_v46 }
 0x84f   :  { %1232 = vrot.lane.b32.xlu0 %v1230_v48, %s3213_s3 }
 0x89d   :  { %v1218_v53 = vpop.permute.xlu1 %1217 }
 0x89e   :  { %v1220_v54 = vadd.f32 %v1218_v53, %v3419_v20 }
 0x8a0   :  { %v2468_v55 = vmul.f32 -1.442695, %v1220_v54 }
 0x8c1   :  { %v1233_v49 = vpop.permute.xlu0 %1232 }
 0x8c2   :  { %v1235_v50 = vadd.f32 %v1233_v49, %v3419_v20 }
 0x8c4   :  { %2952 = vtanh.f32 %v1235_v50 }
 0x8c5   :  { %2954 = vpow2.f32 %v2468_v55 }
 0x8d1   :  { %v2953_v52 = vpop.eup %2952 }
 0x8d2   :  { %1239 = vrot.lane.b32.xlu0 %v2953_v52, %s3215_s17  ;;  %v2955_v56 = vpop.eup %2954 }
 0x8d3   :  { %v1224_v57 = vadd.f32 1.0, %v2955_v56 }
 0x8d5   :  { %2956 = vrcp.f32 %v1224_v57 }
 0x8e2   :  { %v2957_v58 = vpop.eup %2956 }
 0x8e3   :  { %v1237_v59 = vsub.f32 1.0, %v2957_v58  ;;  %v1245_v62 = vmul.f32 %v2957_v58, %v1243_v60 }
 0x944   :  { %v1240_v61 = vpop.permute.xlu0 %1239 }
 0x945   :  { %v1242_v63 = vmul.f32 %v1240_v61, %v1237_v59 }
 0x947   :  { %v3580_v2 = vadd.f32 %v1245_v62, %v1242_v63 }
 0x949   :  { %v3584_v4 = vsel %vm2283_vm5, %v3533_v27, %v3580_v2  ;;  %v1248_v5 = vrot.slane %v3580_v2, 3  ;;  %v1501_v47 = vrot.slane %v3580_v2, 7 }
 0x94b   :  { %1249 = vrot.lane.b32.xlu1 %v1248_v5, %s3215_s17 }
 0x9bd   :  { %v1250_v16 = vpop.permute.xlu1 %1249 }
 0x9be   :  { %2767 = vmatmul.mubr.msk.f32.vlgmr.msra.gmra.mxu1 %vm227_vm2, %v1250_v16  ;;  %2778 = vmatmul.mubr.msk.f32.vlgmr.msra.gmra.mxu0 %vm227_vm2, %v1250_v16 }
 0x9bf   :  { %2781 = vmatpush3.msra.mxu1 %v3358_v9  ;;  %2788 = vmatprep.mubr.msk.f32.mxu1 %vm3212_vm0, %v3211_v0 }
 0x9c0   :  { %2782 = vmatprep.subr.mxu1 %v3211_v0  ;;  %2792 = vmatpush3.msra.mxu0 %v3325_v1 }
 0x9c1   :  { %2783 = vmatpush3.msra.mxu1 %v3367_v11  ;;  %2793 = vmatprep.subr.mxu0 %v3211_v0 }
 0x9c2   :  { %2784 = vmatprep.subr.mxu1 %v3211_v0  ;;  %2794 = vmatpush3.msra.mxu0 %v3333_v3 }
 0x9c3   :  { %2785 = vmatpush3.msra.mxu1 %v3375_v13  ;;  %2795 = vmatprep.subr.mxu0 %v3211_v0 }
 0x9c4   :  { %2786 = vmatprep.subr.mxu1 %v3211_v0  ;;  %2796 = vmatpush3.msra.mxu0 %v3344_v6 }
 0x9c5   :  { %2787 = vmatpush3.msra.mxu1 %v3383_v15  ;;  %2797 = vmatprep.subr.mxu0 %v3211_v0 }
 0x9c6   :  { %2789 = vmatmul.mubr.msk.f32.vlgmr.msra.gmra.mxu1 %vm227_vm2, %v1250_v16  ;;  %2802 = vmatprep.subr.mxu1 %v3211_v0 }
 0x9c7   :  { %2803 = vmatpush3.msra.mxu1 %v3347_v7  ;;  %2798 = vmatpush3.msra.mxu0 %v3353_v8 }
 0x9c8   :  { %2804 = vmatprep.subr.mxu1 %v3211_v0  ;;  %2799 = vmatprep.mubr.msk.f32.mxu0 %vm3212_vm0, %v3211_v0 }
 0x9c9   :  { %2805 = vmatpush3.msra.mxu1 %v3363_v10  ;;  %2810 = vmatprep.mubr.msk.f32.mxu1 %vm3212_vm0, %v3211_v0 }
 0x9ca   :  { %2806 = vmatprep.subr.mxu1 %v3211_v0  ;;  %2813 = vmatprep.subr.mxu0 %v3211_v0 }
 0x9cb   :  { %2807 = vmatpush3.msra.mxu1 %v3372_v12 }
 0x9cc   :  { %2808 = vmatprep.subr.mxu1 %v3211_v0 }
 0x9cd   :  { %2809 = vmatpush3.msra.mxu1 %v3380_v14 }
 0x9ce   :  { %2824 = vmatprep.subr.mxu1 %v3211_v0 }
 0xa7e   :  { %v1319_v17 = vpop.f32.mrf.mxu1  ;;  %v1389_v18 = vpop.f32.mrf.mxu0 }
 0xa7f   :  { %v1320_v21 = vadd.f32 %v1319_v17, %v3417_v19  ;;  %v1390_v22 = vadd.f32 %v1389_v18, %v3426_v35 }
 0xa80   :  { %v2768_v23 = vpop.f32.mrf.mxu1  ;;  %v2779_v24 = vpop.f32.mrf.mxu0 }
 0xa81   :  { %v1464_v25 = vrot.slane %v1320_v21, 4  ;;  %v1474_v26 = vrot.slane %v1390_v22, 4 }
 0xa83   :  { %v1466_v27 = vadd.f32 %v1464_v25, %v3419_v20  ;;  %1475 = vrot.lane.b32.xlu1 %v1474_v26, %s3214_s16 }
 0xa85   :  { %v2472_v28 = vmul.f32 -1.442695, %v1466_v27 }
 0xa86   :  { %v1459_v29 = vpop.f32.mrf.mxu1 }
 0xa87   :  { %2958 = vpow2.f32 %v2472_v28  ;;  %v1460_v33 = vadd.f32 %v1459_v29, %v3423_v32 }
 0xa88   :  { %v2790_v51 = vpop.f32.mrf.mxu1 }
 0xa89   :  { %v1486_v34 = vrot.slane %v1460_v33, 4 }
 0xa94   :  { %v2959_v30 = vpop.eup %2958 }
 0xa95   :  { %v1470_v31 = vadd.f32 1.0, %v2959_v30 }
 0xa97   :  { %2960 = vrcp.f32 %v1470_v31 }
 0xaa4   :  { %v2961_v36 = vpop.eup %2960 }
 0xaa5   :  { %v1488_v37 = vmul.f32 %v2961_v36, %v1486_v34 }
 0xaa7   :  { %1490 = vrot.lane.b32.xlu0 %v1488_v37, %s3213_s3 }
 0xaf5   :  { %v1476_v41 = vpop.permute.xlu1 %1475 }
 0xaf6   :  { %v1478_v42 = vadd.f32 %v1476_v41, %v3419_v20 }
 0xaf8   :  { %v2473_v43 = vmul.f32 -1.442695, %v1478_v42 }
 0xb19   :  { %v1491_v38 = vpop.permute.xlu0 %1490 }
 0xb1a   :  { %v1493_v39 = vadd.f32 %v1491_v38, %v3419_v20 }
 0xb1c   :  { %2962 = vtanh.f32 %v1493_v39 }
 0xb1d   :  { %2964 = vpow2.f32 %v2473_v43 }
 0xb29   :  { %v2963_v40 = vpop.eup %2962 }
 0xb2a   :  { %1497 = vrot.lane.b32.xlu0 %v2963_v40, %s3215_s17  ;;  %v2965_v44 = vpop.eup %2964 }
 0xb2b   :  { %v1482_v45 = vadd.f32 1.0, %v2965_v44 }
 0xb2d   :  { %2966 = vrcp.f32 %v1482_v45 }
 0xb3a   :  { %v2967_v46 = vpop.eup %2966 }
 0xb3b   :  { %v1495_v48 = vsub.f32 1.0, %v2967_v46  ;;  %v1503_v52 = vmul.f32 %v2967_v46, %v1501_v47 }
 0xb9c   :  { %v1498_v49 = vpop.permute.xlu0 %1497 }
 0xb9d   :  { %v1500_v50 = vmul.f32 %v1498_v49, %v1495_v48 }
 0xb9f   :  { %v3631_v53 = vadd.f32 %v1503_v52, %v1500_v50 }
 0xba1   :  { %v3635_v54 = vsel %vm2285_vm6, %v3584_v4, %v3631_v53  ;;  %v1506_v55 = vrot.slane %v3631_v53, 4  ;;  %v1759_v37 = vrot.slane %v3631_v53, 7 }
 0xba3   :  { %1507 = vrot.lane.b32.xlu1 %v1506_v55, %s3215_s17 }
 0xc15   :  { %v1508_v56 = vpop.permute.xlu1 %1507 }
 0xc16   :  { %2800 = vmatmul.mubr.msk.f32.vlgmr.msra.gmra.mxu0 %vm227_vm2, %v1508_v56  ;;  %2811 = vmatmul.mubr.msk.f32.vlgmr.msra.gmra.mxu1 %vm227_vm2, %v1508_v56 }
 0xc17   :  { %2814 = vmatpush3.msra.mxu0 %v3358_v9  ;;  %2821 = vmatprep.mubr.msk.f32.mxu0 %vm3212_vm0, %v3211_v0 }
 0xc18   :  { %2815 = vmatprep.subr.mxu0 %v3211_v0  ;;  %2825 = vmatpush3.msra.mxu1 %v3325_v1 }
 0xc19   :  { %2816 = vmatpush3.msra.mxu0 %v3367_v11  ;;  %2826 = vmatprep.subr.mxu1 %v3211_v0 }
 0xc1a   :  { %2817 = vmatprep.subr.mxu0 %v3211_v0  ;;  %2827 = vmatpush3.msra.mxu1 %v3333_v3 }
 0xc1b   :  { %2818 = vmatpush3.msra.mxu0 %v3375_v13  ;;  %2828 = vmatprep.subr.mxu1 %v3211_v0 }
 0xc1c   :  { %2819 = vmatprep.subr.mxu0 %v3211_v0  ;;  %2829 = vmatpush3.msra.mxu1 %v3344_v6 }
 0xc1d   :  { %2820 = vmatpush3.msra.mxu0 %v3383_v15  ;;  %2830 = vmatprep.subr.mxu1 %v3211_v0 }
 0xc1e   :  { %2822 = vmatmul.mubr.msk.f32.vlgmr.msra.gmra.mxu0 %vm227_vm2, %v1508_v56  ;;  %2835 = vmatprep.subr.mxu0 %v3211_v0 }
 0xc1f   :  { %2836 = vmatpush3.msra.mxu0 %v3347_v7  ;;  %2831 = vmatpush3.msra.mxu1 %v3353_v8 }
 0xc20   :  { %2837 = vmatprep.subr.mxu0 %v3211_v0  ;;  %2832 = vmatprep.mubr.msk.f32.mxu1 %vm3212_vm0, %v3211_v0 }
 0xc21   :  { %2838 = vmatpush3.msra.mxu0 %v3363_v10  ;;  %2843 = vmatprep.mubr.msk.f32.mxu0 %vm3212_vm0, %v3211_v0 }
 0xc22   :  { %2839 = vmatprep.subr.mxu0 %v3211_v0  ;;  %2846 = vmatprep.subr.mxu1 %v3211_v0 }
 0xc23   :  { %2840 = vmatpush3.msra.mxu0 %v3372_v12 }
 0xc24   :  { %2841 = vmatprep.subr.mxu0 %v3211_v0 }
 0xc25   :  { %2842 = vmatpush3.msra.mxu0 %v3380_v14 }
 0xc26   :  { %2857 = vmatprep.subr.mxu0 %v3211_v0 }
 0xcd6   :  { %v1577_v57 = vpop.f32.mrf.mxu0  ;;  %v1647_v58 = vpop.f32.mrf.mxu1 }
 0xcd7   :  { %v1578_v59 = vadd.f32 %v1577_v57, %v3417_v19  ;;  %v1648_v60 = vadd.f32 %v1647_v58, %v3426_v35 }
 0xcd8   :  { %v2801_v61 = vpop.f32.mrf.mxu0  ;;  %v2812_v62 = vpop.f32.mrf.mxu1 }
 0xcd9   :  { %v1722_v63 = vrot.slane %v1578_v59, 3  ;;  %v1732_v2 = vrot.slane %v1648_v60, 3 }
 0xcdb   :  { %v1724_v4 = vadd.f32 %v1722_v63, %v3419_v20  ;;  %1733 = vrot.lane.b32.xlu1 %v1732_v2, %s3214_s16 }
 0xcdd   :  { %v2477_v5 = vmul.f32 -1.442695, %v1724_v4 }
 0xcde   :  { %v1717_v16 = vpop.f32.mrf.mxu0 }
 0xcdf   :  { %2968 = vpow2.f32 %v2477_v5  ;;  %v1718_v22 = vadd.f32 %v1717_v16, %v3423_v32 }
 0xce0   :  { %v2823_v17 = vpop.f32.mrf.mxu0 }
 0xce1   :  { %v1744_v23 = vrot.slane %v1718_v22, 3  ;;  %v3004_v17 = vld [vmem:[#allocation8 + $0x18] sm:$0xff]  ;;  %v3007_v22 = vld [vmem:[#allocation8] sm:$0xff] }
 0xcec   :  { %v2969_v18 = vpop.eup %2968 }
 0xced   :  { %v1728_v21 = vadd.f32 1.0, %v2969_v18  ;;  %v3005_v18 = vld [vmem:[#allocation8 + $0x10] sm:$0xff] }
 0xcef   :  { %2970 = vrcp.f32 %v1728_v21  ;;  %v3006_v21 = vld [vmem:[#allocation8 + $0x8] sm:$0xff] }
 0xcfc   :  { %v2971_v24 = vpop.eup %2970 }
 0xcfd   :  { %v1746_v25 = vmul.f32 %v2971_v24, %v1744_v23 }
 0xcff   :  { %1748 = vrot.lane.b32.xlu0 %v1746_v25, %s3213_s3  ;;  %v3008_v25 = vld [vmem:[#allocation10] sm:$0x1] }
 0xd4d   :  { %v1734_v29 = vpop.permute.xlu1 %1733 }
 0xd4e   :  { %v1736_v51 = vadd.f32 %v1734_v29, %v3419_v20 }
 0xd50   :  { %v2478_v30 = vmul.f32 -1.442695, %v1736_v51 }
 0xd71   :  { %v1749_v26 = vpop.permute.xlu0 %1748 }
 0xd72   :  { %v1751_v27 = vadd.f32 %v1749_v26, %v3419_v20 }
 0xd74   :  { %2972 = vtanh.f32 %v1751_v27 }
 0xd75   :  { %2974 = vpow2.f32 %v2478_v30 }
 0xd81   :  { %v2973_v28 = vpop.eup %2972 }
 0xd82   :  { %1755 = vrot.lane.b32.xlu0 %v2973_v28, %s3215_s17  ;;  %v2975_v31 = vpop.eup %2974 }
 0xd83   :  { %v1740_v33 = vadd.f32 1.0, %v2975_v31 }
 0xd85   :  { %2976 = vrcp.f32 %v1740_v33 }
 0xd92   :  { %v2977_v34 = vpop.eup %2976 }
 0xd93   :  { %v1753_v36 = vsub.f32 1.0, %v2977_v34  ;;  %v1761_v39 = vmul.f32 %v2977_v34, %v1759_v37 }
 0xdf4   :  { %v1756_v38 = vpop.permute.xlu0 %1755 }
 0xdf5   :  { %v1758_v40 = vmul.f32 %v1756_v38, %v1753_v36 }
 0xdf7   :  { %v3682_v41 = vadd.f32 %v1761_v39, %v1758_v40  ;;  %v3009_v39 = vld [vmem:[#allocation13] sm:$0x1] }
 0xdf9   :  { %v1764_v42 = vrot.slane %v3682_v41, 5  ;;  %v3687_v43 = vsel %vm2287_vm7, %v3635_v54, %v3682_v41  ;;  %v2017_v59 = vrot.slane %v3682_v41, 7 }
 0xdfb   :  { %1765 = vrot.lane.b32.xlu1 %v1764_v42, %s3215_s17 }
 0xe6d   :  { %v1766_v44 = vpop.permute.xlu1 %1765 }
 0xe6e   :  { %2833 = vmatmul.mubr.msk.f32.vlgmr.msra.gmra.mxu1 %vm227_vm2, %v1766_v44  ;;  %2844 = vmatmul.mubr.msk.f32.vlgmr.msra.gmra.mxu0 %vm227_vm2, %v1766_v44 }
 0xe6f   :  { %2847 = vmatpush3.msra.mxu1 %v3358_v9  ;;  %2854 = vmatprep.mubr.msk.f32.mxu1 %vm3212_vm0, %v3211_v0 }
 0xe70   :  { %2848 = vmatprep.subr.mxu1 %v3211_v0  ;;  %2858 = vmatpush3.msra.mxu0 %v3325_v1 }
 0xe71   :  { %2849 = vmatpush3.msra.mxu1 %v3367_v11  ;;  %2859 = vmatprep.subr.mxu0 %v3211_v0 }
 0xe72   :  { %2850 = vmatprep.subr.mxu1 %v3211_v0  ;;  %2860 = vmatpush3.msra.mxu0 %v3333_v3 }
 0xe73   :  { %2851 = vmatpush3.msra.mxu1 %v3375_v13  ;;  %2861 = vmatprep.subr.mxu0 %v3211_v0 }
 0xe74   :  { %2852 = vmatprep.subr.mxu1 %v3211_v0  ;;  %2862 = vmatpush3.msra.mxu0 %v3344_v6 }
 0xe75   :  { %2853 = vmatpush3.msra.mxu1 %v3383_v15  ;;  %2863 = vmatprep.subr.mxu0 %v3211_v0 }
 0xe76   :  { %2855 = vmatmul.mubr.msk.f32.vlgmr.msra.gmra.mxu1 %vm227_vm2, %v1766_v44  ;;  %2868 = vmatprep.subr.mxu1 %v3211_v0 }
 0xe77   :  { %2869 = vmatpush3.msra.mxu1 %v3347_v7  ;;  %2864 = vmatpush3.msra.mxu0 %v3353_v8 }
 0xe78   :  { %2870 = vmatprep.subr.mxu1 %v3211_v0  ;;  %2865 = vmatprep.mubr.msk.f32.mxu0 %vm3212_vm0, %v3211_v0 }
 0xe79   :  { %2871 = vmatpush3.msra.mxu1 %v3363_v10  ;;  %2876 = vmatprep.mubr.msk.f32.mxu1 %vm3212_vm0, %v3211_v0 }
 0xe7a   :  { %2872 = vmatprep.subr.mxu1 %v3211_v0  ;;  %2879 = vmatprep.subr.mxu0 %v3211_v0 }
 0xe7b   :  { %2873 = vmatpush3.msra.mxu1 %v3372_v12 }
 0xe7c   :  { %2874 = vmatprep.subr.mxu1 %v3211_v0 }
 0xe7d   :  { %2875 = vmatpush3.msra.mxu1 %v3380_v14 }
 0xe7e   :  { %2890 = vmatprep.subr.mxu1 %v3211_v0 }
 0xf2e   :  { %v1835_v1 = vpop.f32.mrf.mxu1  ;;  %v1905_v3 = vpop.f32.mrf.mxu0 }
 0xf2f   :  { %v1836_v6 = vadd.f32 %v1835_v1, %v3417_v19  ;;  %v1906_v7 = vadd.f32 %v1905_v3, %v3426_v35  ;;  %v2296_v1 = vld [vmem:[%s3803_s9 + $0x18] sm:$0xff]  ;;  %v2295_v3 = vld [vmem:[%s3803_s9 + $0x10] sm:$0xff] }
 0xf30   :  { %v2834_v8 = vpop.f32.mrf.mxu1  ;;  %v2845_v9 = vpop.f32.mrf.mxu0 }
 0xf31   :  { %v1980_v10 = vrot.slane %v1836_v6, 2  ;;  %v1990_v11 = vrot.slane %v1906_v7, 2  ;;  %v2294_v6 = vld [vmem:[%s3803_s9 + $0x8] sm:$0xff]  ;;  %v2293_v7 = vld [vmem:[%s3803_s9] sm:$0xff] }
 0xf33   :  { %v1982_v13 = vadd.f32 %v1980_v10, %v3419_v20  ;;  %1991 = vrot.lane.b32.xlu1 %v1990_v11, %s3214_s16 }
 0xf35   :  { %v2482_v12 = vmul.f32 -1.442695, %v1982_v13 }
 0xf36   :  { %v1975_v15 = vpop.f32.mrf.mxu1 }
 0xf37   :  { %2978 = vpow2.f32 %v2482_v12  ;;  %v1976_v47 = vadd.f32 %v1975_v15, %v3423_v32 }
 0xf38   :  { %v2856_v14 = vpop.f32.mrf.mxu1 }
 0xf39   :  { %v2002_v19 = vrot.slane %v1976_v47, 2 }
 0xf44   :  { %v2979_v45 = vpop.eup %2978 }
 0xf45   :  { %v1986_v46 = vadd.f32 1.0, %v2979_v45 }
 0xf47   :  { %2980 = vrcp.f32 %v1986_v46 }
 0xf54   :  { %v2981_v48 = vpop.eup %2980 }
 0xf55   :  { %v2004_v49 = vmul.f32 %v2981_v48, %v2002_v19 }
 0xf57   :  { %2006 = vrot.lane.b32.xlu0 %v2004_v49, %s3213_s3 }
 0xfa5   :  { %v1992_v54 = vpop.permute.xlu1 %1991 }
 0xfa6   :  { %v1994_v55 = vadd.f32 %v1992_v54, %v3419_v20 }
 0xfa8   :  { %v2483_v56 = vmul.f32 -1.442695, %v1994_v55 }
 0xfc9   :  { %v2007_v50 = vpop.permute.xlu0 %2006 }
 0xfca   :  { %v2009_v52 = vadd.f32 %v2007_v50, %v3419_v20 }
 0xfcc   :  { %2982 = vtanh.f32 %v2009_v52 }
 0xfcd   :  { %2984 = vpow2.f32 %v2483_v56 }
 0xfd9   :  { %v2983_v53 = vpop.eup %2982 }
 0xfda   :  { %2013 = vrot.lane.b32.xlu0 %v2983_v53, %s3215_s17  ;;  %v2985_v57 = vpop.eup %2984 }
 0xfdb   :  { %v1998_v58 = vadd.f32 1.0, %v2985_v57 }
 0xfdd   :  { %2986 = vrcp.f32 %v1998_v58 }
 0xfea   :  { %v2987_v32 = vpop.eup %2986 }
 0xfeb   :  { %v2011_v60 = vsub.f32 1.0, %v2987_v32  ;;  %v2019_v63 = vmul.f32 %v2987_v32, %v2017_v59 }
0x104c   :  { %v2014_v61 = vpop.permute.xlu0 %2013 }
0x104d   :  { %v2016_v62 = vmul.f32 %v2014_v61, %v2011_v60 }
0x104f   :  { %v3733_v2 = vadd.f32 %v2019_v63, %v2016_v62 }
0x1051   :  { %v2022_v4 = vrot.slane %v3733_v2, 6  ;;  %v3738_v5 = vsel %vm2289_vm8, %v3687_v43, %v3733_v2  ;;  %v2275_v45 = vrot.slane %v3733_v2, 7 }
0x1053   :  { %2023 = vrot.lane.b32.xlu1 %v2022_v4, %s3215_s17 }
0x10c5   :  { %v2024_v16 = vpop.permute.xlu1 %2023 }
0x10c6   :  { %2866 = vmatmul.mubr.msk.f32.vlgmr.msra.gmra.mxu0 %vm227_vm2, %v2024_v16  ;;  %2877 = vmatmul.mubr.msk.f32.vlgmr.msra.gmra.mxu1 %vm227_vm2, %v2024_v16 }
0x10c7   :  { %2880 = vmatpush3.msra.mxu0 %v3004_v17  ;;  %2887 = vmatprep.mubr.msk.f32.mxu0 %vm3212_vm0, %v3211_v0 }
0x10c8   :  { %2881 = vmatprep.subr.mxu0 %v3211_v0  ;;  %2898 = vmatprep.mubr.msk.f32.mxu1 %vm3212_vm0, %v3211_v0 }
0x10c9   :  { %2882 = vmatpush3.msra.mxu0 %v3005_v18  ;;  %2891 = vmatpush3.msra.mxu1 %v2296_v1 }
0x10ca   :  { %2883 = vmatprep.subr.mxu0 %v3211_v0  ;;  %2892 = vmatprep.subr.mxu1 %v3211_v0 }
0x10cb   :  { %2884 = vmatpush3.msra.mxu0 %v3006_v21  ;;  %2893 = vmatpush3.msra.mxu1 %v2295_v3 }
0x10cc   :  { %2885 = vmatprep.subr.mxu0 %v3211_v0  ;;  %2894 = vmatprep.subr.mxu1 %v3211_v0 }
0x10cd   :  { %2886 = vmatpush3.msra.mxu0 %v3007_v22  ;;  %2895 = vmatpush3.msra.mxu1 %v2294_v6 }
0x10ce   :  { %2888 = vmatmul.mubr.msk.f32.vlgmr.msra.gmra.mxu0 %vm227_vm2, %v2024_v16  ;;  %2896 = vmatprep.subr.mxu1 %v3211_v0 }
0x10cf   :  { %2897 = vmatpush3.msra.mxu1 %v2293_v7 }
0x1186   :  { %v2093_v23 = vpop.f32.mrf.mxu0  ;;  %v2163_v24 = vpop.f32.mrf.mxu1 }
0x1187   :  { %v2094_v26 = vadd.f32 %v3008_v25, %v2093_v23  ;;  %v2164_v27 = vadd.f32 %v2163_v24, %v3426_v35 }
0x1188   :  { %v2867_v28 = vpop.f32.mrf.mxu0  ;;  %v2878_v29 = vpop.f32.mrf.mxu1 }
0x1189   :  { %v2238_v51 = vrot.slane %v2094_v26, 1  ;;  %v2248_v30 = vrot.slane %v2164_v27, 1 }
0x118b   :  { %v2240_v31 = vadd.f32 %v2238_v51, %v3419_v20  ;;  %2249 = vrot.lane.b32.xlu1 %v2248_v30, %s3214_s16 }
0x118d   :  { %v2487_v33 = vmul.f32 -1.442695, %v2240_v31 }
0x118e   :  { %v2233_v34 = vpop.f32.mrf.mxu0 }
0x118f   :  { %2988 = vpow2.f32 %v2487_v33  ;;  %v2234_v40 = vadd.f32 %v3009_v39, %v2233_v34 }
0x1190   :  { %v2889_v36 = vpop.f32.mrf.mxu0 }
0x1191   :  { %v2260_v41 = vrot.slane %v2234_v40, 1 }
0x119c   :  { %v2989_v37 = vpop.eup %2988 }
0x119d   :  { %v2244_v38 = vadd.f32 1.0, %v2989_v37 }
0x119f   :  { %2990 = vrcp.f32 %v2244_v38 }
0x11ac   :  { %v2991_v42 = vpop.eup %2990 }
0x11ad   :  { %v2262_v35 = vmul.f32 %v2991_v42, %v2260_v41 }
0x11af   :  { %2264 = vrot.lane.b32.xlu0 %v2262_v35, %s3213_s3 }
0x11fd   :  { %v2250_v9 = vpop.permute.xlu1 %2249 }
0x11fe   :  { %v2252_v10 = vadd.f32 %v2250_v9, %v3419_v20 }
0x1200   :  { %v2488_v11 = vmul.f32 -1.442695, %v2252_v10 }
0x1221   :  { %v2265_v43 = vpop.permute.xlu0 %2264 }
0x1222   :  { %v2267_v44 = vadd.f32 %v2265_v43, %v3419_v20  ;;  %v2489_v20 = vld [vmem:[%s3804_s10] ss:$0 sm:$0xff]  ;;  %s3216_s10 = smov 120  }
0x1224   :  { %2992 = vtanh.f32 %v2267_v44 }
0x1225   :  { %2994 = vpow2.f32 %v2488_v11 }
0x1231   :  { %v2993_v8 = vpop.eup %2992 }
0x1232   :  { %2271 = vrot.lane.b32.xlu0 %v2993_v8, %s3215_s17  ;;  %v2995_v13 = vpop.eup %2994 }
0x1233   :  { %v2256_v12 = vadd.f32 1.0, %v2995_v13 }
0x1235   :  { %2996 = vrcp.f32 %v2256_v12 }
0x1242   :  { %v2997_v15 = vpop.eup %2996 }
0x1243   :  { %v2269_v14 = vsub.f32 1.0, %v2997_v15  ;;  %v2277_v47 = vmul.f32 %v2997_v15, %v2275_v45 }
0x12a4   :  { %v2272_v46 = vpop.permute.xlu0 %2271 }
0x12a5   :  { %v2274_v19 = vmul.f32 %v2272_v46, %v2269_v14 }
0x12a7   :  { %v2278_v0 = vadd.f32 %v2277_v47, %v2274_v19 }
0x12a9   :  { %v2292_v48 = vsel %vm2291_vm9, %v3738_v5, %v2278_v0 }
0x12aa   :  { %2305 = vrot.lane.b32.xlu1 %v2292_v48, %s3215_s17 }
0x131c   :  { %v2306_v49 = vpop.permute.xlu1 %2305 }
0x131d   :  { %2899 = vmatmul.mubr.msk.f32.vlgmr.msra.gmra.mxu1 %vm227_vm2, %v2306_v49 }
0x13dd   :  { %v2375_v50 = vpop.f32.mrf.mxu1 }
0x13de   :  { %v2376_v52 = vadd.f32 %v2489_v20, %v2375_v50 }
0x13df   :  { %v2900_v53 = vpop.f32.mrf.mxu1 }
0x13e0   :  { %2998 = vtanh.f32 %v2376_v52  ;;  %v2385_v54 = vsel %vm2384_vm10, %v2376_v52, -inf }
0x13e1   :  { %2386 = vmax.xlane.f32.xlu0 %v2385_v54 }
0x13ed   :  { %v2999_v55 = vpop.eup %2998 }
0x13ee   :  { %v2380_v56 = vadd.f32 1.0, %v2999_v55 }
0x13f0   :  { %v2381_v57 = vmul.f32 0.5, %v2380_v56 }
0x13f2   :  { %2383 = vst.msk [vmem:[#allocation14] sm:$0xff] %vm2382_vm11, %v2381_v57 }
0x13f7   :  { %2409 = vrot.lane.b32.xlu0 %v2278_v0, %s3215_s17 }
0x146a   :  { %v2387_v58 = vpop.xlane.xlu0 %2386 }
0x146b   :  { %v2388_v32 = vsub.f32 %v2376_v52, %v2387_v58 }
0x146d   :  { %v2389_v59 = vmul.f32 1.442695, %v2388_v32 }
0x146e   :  { %v2410_v60 = vpop.permute.xlu0 %2409 }
0x146f   :  { %3000 = vpow2.f32 %v2389_v59  ;;  %2413 = vst.msk [vmem:[#allocation15 - $0x7] sm:$0x80] %vm2412_vm12, %v2410_v60 }
0x147c   :  { %v3001_v61 = vpop.eup %3000 }
0x147d   :  { %2392 = vrot.lane.b32.xlu1 %v3001_v61, %s3216_s10 }
0x14ef   :  { %v2393_v62 = vpop.permute.xlu1 %2392 }
0x14f0   :  { %v2396_v63 = vsel %vm2395_vm13, %v2393_v62, 0.0 }
0x14f1   :  { %2397 = vadd.xlane.f32.xlu1 %v2396_v63 }
0x157a   :  { %v2398_v2 = vpop.xlane.xlu1 %2397 }
0x157b   :  { %3002 = vlog2.f32 %v2398_v2 }
0x157c   :  { %3161 = shalt.err (!%p3158_p11)
}
0x157d   :  { %2423 = dma.vmem_to_hbm [thread:$0]  %s2421_s20, 128, %s3805_s11, [#allocation4]  }
0x157e   :  { %s3170_s29 = scalar_lea.vmem %s2433_s8, 16  ;;  %s3174_s30 = scalar_lea.vmem %s2433_s8, 32 }
0x157f   :  { %p3171_p12 = scmp.ne.s32.totalorder %s2433_s8, %s3170_s29  ;;  %p3175_p13 = scmp.lt.s32.totalorder %s2433_s8, %s2433_s8 }
0x1580   :  { %p3176_p0 = scmp.lt.s32.totalorder %s3174_s30, %s3170_s29 }
0x1582   :  { %p3177_p1 = por %p3176_p0, %p3175_p13 }
0x1584   :  { %p3178_p2 = pnand %p3177_p1, %p3171_p12 }
0x1586   :  { %3181 = shalt.err (!%p3178_p2)
}
0x1587   :  { %2435 = dma.vmem_to_hbm [thread:$0]  %s2433_s8, 16, %s3807_s13, [#allocation16]  }
0x1588   :  { %v3003_v4 = vpop.eup %3002 }
0x1589   :  { %v2400_v5 = vmul.f32 0.6931472, %v3003_v4 }
0x158b   :  { %v2401_v16 = vadd.f32 %v2400_v5, %v2387_v58 }
0x158d   :  { %v2402_v17 = vsub.f32 %v2376_v52, %v2401_v16 }
0x158f   :  { %2404 = vrot.lane.b32.xlu1 %v2402_v17, %s3216_s10 }
0x1601   :  { %v2405_v18 = vpop.permute.xlu1 %2404 }
0x1602   :  { %2407 = vst.msk [vmem:[%s3806_s12] sm:$0xff] %vm2395_vm13, %v2405_v18 }
0x1603   :  { %3198 = dma.done.wait [#allocation4], 128  }
0x1604   :  { %3199 = vsyncadd [#allocation4], 4294967168 }
0x1605   :  { %3200 = dma.done.wait [#allocation16], 16  }
0x1606   :  { %3201 = vsyncadd [#allocation16], 4294967280 }
0x1607   :  { %2444 = vsyncpa [#allocation3], 1 }
0x1608   :  { %2445 = vsyncpa [#allocation6], 1 }
0x1609   :  { %2446 = vsyncpa [#allocation9], 1 }
0x160a   :  { %2447 = vsyncpa [#allocation12], 1 }
0x160b   :  { %2448 = vsyncpa [#allocation4], 1 }
0x160c   :  { %2449 = vsyncpa [#allocation16], 1 }

</bundles_post_ra>
